<compile_context>
chip_gen: v7x
topology: tpu7x:2x2x1
jax: 0.10.0
libtpu: 0.0.40
codegen_flags: <defaults>
</compile_context>

<pallas_src>
import functools

import jax
import jax.numpy as jnp
from jax.experimental import pallas as pl
from jax.experimental.pallas import tpu as pltpu  # noqa: F401

D_MODEL = 32
NHEAD = 4
HEAD_DIM = D_MODEL // NHEAD
FFN_DIM = 64
LN_EPS = 1e-5

# bf16 MXU operands (native on v6e/v7x, fine on v5e); f32 accumulation.
MATMUL_DTYPE = jnp.bfloat16


# --------------------------------------------------------------------------
# The fused layer kernel
# --------------------------------------------------------------------------

def _pos_decoder_layer_kernel(
    # activations
    q_src_ref, enc_cat_ref, ca_bias_ref,
    # self-attention (pre-composed packed QKV) + norm1
    sa_wqkv_ref, sa_bqkv_ref, sa_wo_ref, sa_bo_ref, ln1_g_ref, ln1_b_ref,
    # cross-attention (pre-composed) + norm3
    ca_wqt_ref, ca_wqs_ref, ca_bq_ref, ca_wkv_ref, ca_bkv_ref,
    ca_wo_ref, ca_bo_ref, ln3_g_ref, ln3_b_ref,
    # FFN + norm4
    w1_ref, b1_ref, w2_ref, b2_ref, ln4_g_ref, ln4_b_ref,
    # outputs
    out_ref, attnw_ref,
    *, nhead, head_dim, d_model):
  f32 = jnp.float32
  cdt = sa_wqkv_ref.dtype  # MXU operand dtype (bf16, or f32 if configured)

  def softmax(s):
    s = s - jnp.max(s, axis=-1, keepdims=True)
    e = jnp.exp(s)
    return e / jnp.sum(e, axis=-1, keepdims=True)

  def layer_norm(y, g_ref, b_ref):
    mu = jnp.mean(y, axis=-1, keepdims=True)
    yc = y - mu
    var = jnp.mean(yc * yc, axis=-1, keepdims=True)
    return yc * jax.lax.rsqrt(var + LN_EPS) * g_ref[...] + b_ref[...]

  def attn_heads(q, k, v, wo_ref, bo_ref, score_bias=None, want_weights=False):
    """q:(Lq,C) k,v:(Lk,C) f32 with heads packed along lanes (1/sqrt(hd)
    already folded into q).  Returns (Lq,C) output and summed attn weights."""
    acc = bo_ref[...].astype(f32)                              # (1, C)
    wsum = None
    for h in range(nhead):                                     # static unroll
      lo = h * head_dim
      qh = q[:, lo:lo + head_dim].astype(cdt)                  # (Lq, hd)
      kh = k[:, lo:lo + head_dim].astype(cdt)                  # (Lk, hd)
      vh = v[:, lo:lo + head_dim].astype(cdt)                  # (Lk, hd)
      s = jax.lax.dot_general(qh, kh, (((1,), (1,)), ((), ())),
                              preferred_element_type=f32)      # (Lq, Lk)
      if score_bias is not None:
        s = s + score_bias
      p = softmax(s)
      if want_weights:
        wsum = p if wsum is None else wsum + p
      oh = jnp.dot(p.astype(cdt), vh, preferred_element_type=f32)   # (Lq, hd)
      acc = acc + jnp.dot(oh.astype(cdt), wo_ref[h],
                          preferred_element_type=f32)          # += (Lq, C)
    return acc, wsum

  q_src = q_src_ref[...]                    # (t, 4C) f32: [tgt0|time|pos|sine]
  tgt0 = q_src[:, :d_model]                 # residual into norm1
  q_src_c = q_src.astype(cdt)
  enc_c = enc_cat_ref[...].astype(cdt)      # (Lk, 2C): [enc|enc_pos]

  # ---------------- self attention + norm1 ----------------
  qkv = (jnp.dot(q_src_c, sa_wqkv_ref[...], preferred_element_type=f32)
         + sa_bqkv_ref[...])                                   # (t, 3C)
  sa_out, wsum = attn_heads(qkv[:, :d_model],
                            qkv[:, d_model:2 * d_model],
                            qkv[:, 2 * d_model:],
                            sa_wo_ref, sa_bo_ref, want_weights=True)
  attnw_ref[...] = wsum * (1.0 / nhead)
  tgt = layer_norm(tgt0 + sa_out, ln1_g_ref, ln1_b_ref)

  # ---------------- cross attention + norm3 ----------------
  # Per-clip batching handled by the additive score mask (0 / -1e30).
  q_ca = (jnp.dot(tgt.astype(cdt), ca_wqt_ref[...], preferred_element_type=f32)
          + jnp.dot(q_src_c, ca_wqs_ref[...], preferred_element_type=f32)
          + ca_bq_ref[...])                                    # (t, C)
  kv = (jnp.dot(enc_c, ca_wkv_ref[...], preferred_element_type=f32)
        + ca_bkv_ref[...])                                     # (Lk, 2C)
  ca_out, _ = attn_heads(q_ca, kv[:, :d_model], kv[:, d_model:],
                         ca_wo_ref, ca_bo_ref, score_bias=ca_bias_ref[...])
  tgt = layer_norm(tgt + ca_out, ln3_g_ref, ln3_b_ref)

  # ---------------- feed forward + norm4 ----------------
  h1 = jnp.maximum(jnp.dot(tgt.astype(cdt), w1_ref[...],
                           preferred_element_type=f32) + b1_ref[...], 0.0)
  ffn = jnp.dot(h1.astype(cdt), w2_ref[...],
                preferred_element_type=f32) + b2_ref[...]
  out_ref[...] = layer_norm(tgt + ffn, ln4_g_ref, ln4_b_ref)


# --------------------------------------------------------------------------
# Raw parameters (deterministic synthetic init; shapes match the module)
# --------------------------------------------------------------------------

def init_params(key):
  keys = iter(jax.random.split(key, 64))

  def lin(out_dim, in_dim):
    kw, kb = next(keys), next(keys)
    w = jax.random.normal(kw, (out_dim, in_dim), jnp.float32) * 0.05
    b = jax.random.normal(kb, (out_dim,), jnp.float32) * 0.05
    return (w, b)

  p = {}
  for name in ['sa_qcontent', 'sa_qpos', 'sa_qtime', 'sa_kcontent', 'sa_kpos',
               'sa_ktime', 'sa_v', 'ca_qcontent', 'ca_qpos', 'ca_kcontent',
               'ca_kpos', 'ca_qtime', 'ca_v', 'ca_qpos_sine']:
    p[name] = lin(D_MODEL, D_MODEL)
  for name in ['sa_mha', 'ca_mha']:
    p[name] = {'wq': lin(D_MODEL, D_MODEL), 'wk': lin(D_MODEL, D_MODEL),
               'wv': lin(D_MODEL, D_MODEL), 'wo': lin(D_MODEL, D_MODEL)}
  p['linear1'] = lin(FFN_DIM, D_MODEL)
  p['linear2'] = lin(D_MODEL, FFN_DIM)
  for name in ['norm1', 'norm3', 'norm4']:
    p[name] = (jnp.ones((D_MODEL,), jnp.float32),
               jnp.zeros((D_MODEL,), jnp.float32))
  return p


# --------------------------------------------------------------------------
# One-time parameter preparation: compose, pack, (optionally) cast to bf16
# --------------------------------------------------------------------------

def prepare_params(raw, is_first=True, matmul_dtype=MATMUL_DTYPE):
  C, H, hd = D_MODEL, NHEAD, HEAD_DIM
  f32 = jnp.float32
  scale = 1.0 / float(hd) ** 0.5
  zw = jnp.zeros((C, C), f32)

  wT = lambda p: p[0].T.astype(f32)          # (in, out) layout
  bb = lambda p: p[1].astype(f32)

  sa, ca = raw['sa_mha'], raw['ca_mha']

  def pack_out(mha):
    wo_t = wT(mha['wo'])                                          # (C, C)
    w = jnp.stack([wo_t[h * hd:(h + 1) * hd, :] for h in range(H)])
    return w.astype(matmul_dtype), bb(mha['wo']).reshape(1, C)

  # ---- self attention: q_src source order is [tgt0 | time | pos | sine] ----
  Wq, bq = wT(sa['wq']), bb(sa['wq'])
  Wk, bk = wT(sa['wk']), bb(sa['wk'])
  Wv, bv = wT(sa['wv']), bb(sa['wv'])
  sa_q_w = scale * jnp.concatenate(
      [wT(raw['sa_qcontent']) @ Wq, wT(raw['sa_qtime']) @ Wq,
       wT(raw['sa_qpos']) @ Wq, zw], axis=0)                      # (4C, C)
  sa_q_b = scale * ((bb(raw['sa_qcontent']) + bb(raw['sa_qtime'])
                     + bb(raw['sa_qpos'])) @ Wq + bq)
  sa_k_w = jnp.concatenate(
      [wT(raw['sa_kcontent']) @ Wk, wT(raw['sa_ktime']) @ Wk,
       wT(raw['sa_kpos']) @ Wk, zw], axis=0)
  sa_k_b = (bb(raw['sa_kcontent']) + bb(raw['sa_ktime'])
            + bb(raw['sa_kpos'])) @ Wk + bk
  sa_v_w = jnp.concatenate([wT(raw['sa_v']) @ Wv, zw, zw, zw], axis=0)
  sa_v_b = bb(raw['sa_v']) @ Wv + bv
  sa_wqkv = jnp.concatenate([sa_q_w, sa_k_w, sa_v_w], axis=1)     # (4C, 3C)
  sa_bqkv = jnp.concatenate([sa_q_b, sa_k_b, sa_v_b]).reshape(1, 3 * C)
  sa_wo, sa_bo = pack_out(sa)

  # ---- cross attention ----
  qpos_coef = 1.0 if is_first else 0.0
  # NOTE: the reference adds ca_kpos twice when is_first (once in the branch,
  # once after the per-head view); reproduced faithfully via coef=2.
  kpos_coef = 2.0 if is_first else 1.0
  Wq, bq = wT(ca['wq']), bb(ca['wq'])
  Wk, bk = wT(ca['wk']), bb(ca['wk'])
  Wv, bv = wT(ca['wv']), bb(ca['wv'])
  ca_wqt = scale * (wT(raw['ca_qcontent']) @ Wq)                  # acts on tgt
  ca_wqs = scale * jnp.concatenate(
      [zw, wT(raw['ca_qtime']) @ Wq,
       qpos_coef * (wT(raw['ca_qpos']) @ Wq),
       wT(raw['ca_qpos_sine']) @ Wq], axis=0)                     # acts on q_src
  ca_bq = (scale * ((bb(raw['ca_qcontent']) + qpos_coef * bb(raw['ca_qpos'])
                     + bb(raw['ca_qpos_sine']) + bb(raw['ca_qtime'])) @ Wq + bq)
           ).reshape(1, C)
  ca_k_w = jnp.concatenate([wT(raw['ca_kcontent']) @ Wk,
                            kpos_coef * (wT(raw['ca_kpos']) @ Wk)], axis=0)
  ca_k_b = (bb(raw['ca_kcontent']) + kpos_coef * bb(raw['ca_kpos'])) @ Wk + bk
  ca_v_w = jnp.concatenate([wT(raw['ca_v']) @ Wv, zw], axis=0)
  ca_v_b = bb(raw['ca_v']) @ Wv + bv
  ca_wkv = jnp.concatenate([ca_k_w, ca_v_w], axis=1)              # (2C, 2C)
  ca_bkv = jnp.concatenate([ca_k_b, ca_v_b]).reshape(1, 2 * C)
  ca_wo, ca_bo = pack_out(ca)

  # ---- FFN + LayerNorms ----
  w1 = raw['linear1'][0].T.astype(matmul_dtype)
  b1 = raw['linear1'][1].reshape(1, -1).astype(f32)
  w2 = raw['linear2'][0].T.astype(matmul_dtype)
  b2 = raw['linear2'][1].reshape(1, -1).astype(f32)
  ln = lambda n: (raw[n][0].reshape(1, C).astype(f32),
                  raw[n][1].reshape(1, C).astype(f32))
  ln1_g, ln1_b = ln('norm1')
  ln3_g, ln3_b = ln('norm3')
  ln4_g, ln4_b = ln('norm4')

  return (sa_wqkv.astype(matmul_dtype), sa_bqkv, sa_wo, sa_bo, ln1_g, ln1_b,
          ca_wqt.astype(matmul_dtype), ca_wqs.astype(matmul_dtype), ca_bq,
          ca_wkv.astype(matmul_dtype), ca_bkv, ca_wo, ca_bo, ln3_g, ln3_b,
          w1, b1, w2, b2, ln4_g, ln4_b)


# --------------------------------------------------------------------------
# Forward: one fused pallas_call (whole-array VMEM blocks, no grid)
# --------------------------------------------------------------------------

@jax.jit
def pos_decoder_layer_forward(packed_params, query_tgt, query_pos,
                              query_time_embed, query_sine_embed,
                              encoded_feature, encoded_pos):
  t, b, c = query_tgt.shape
  n, bs, f = encoded_feature.shape
  assert c == D_MODEL and f == c and b == 1 and bs == t * b

  # Lane-dense source slabs (pure layout work, folded by XLA before the call):
  #   q_src   (t, 4C)    = [tgt0 | time | pos | sine]
  #   enc_cat (n*bs, 2C) = [encoded_feature | encoded_pos]
  q_src = jnp.concatenate(
      [query_tgt[:, 0, :], query_time_embed[:, 0, :],
       query_pos[:, 0, :], query_sine_embed[:, 0, :]], axis=-1)
  enc_cat = jnp.concatenate(
      [encoded_feature.reshape(n * bs, c), encoded_pos.reshape(n * bs, c)],
      axis=-1)

  # Cross-attn additive score mask: flattened key j belongs to clip (j % bs);
  # query/clip row i may only attend its own clip.  Shape-only -> a constant.
  key_clip = jnp.arange(n * bs, dtype=jnp.int32) % bs
  ca_bias = jnp.where(
      key_clip[None, :] == jnp.arange(t, dtype=jnp.int32)[:, None],
      0.0, -1e30).astype(jnp.float32)                             # (t, n*bs)

  kernel = functools.partial(_pos_decoder_layer_kernel, nhead=NHEAD,
                             head_dim=HEAD_DIM, d_model=D_MODEL)
  out2d, attnw = pl.pallas_call(
      kernel,
      out_shape=(jax.ShapeDtypeStruct((t, c), jnp.float32),
                 jax.ShapeDtypeStruct((t, t), jnp.float32)),
  )(q_src, enc_cat, ca_bias, *packed_params)

  return out2d.reshape(t, b, c), attnw.reshape(b, t, t)


# --------------------------------------------------------------------------

if __name__ == "__main__":
  key = jax.random.PRNGKey(0)
  kp, k1, k2, k3, k4, k5, k6 = jax.random.split(key, 7)

  t, b, n = 8, 1, 16            # query frames, query batch (must be 1), tokens
  bs = t * b                    # encoded-feature batch (must equal t*b)

  query_tgt = jax.random.normal(k1, (t, b, D_MODEL), jnp.float32)
  query_pos = jax.random.normal(k2, (t, b, D_MODEL), jnp.float32)
  query_time_embed = jax.random.normal(k3, (t, b, D_MODEL), jnp.float32)
  query_sine_embed = jax.random.normal(k4, (t, b, D_MODEL), jnp.float32)
  encoded_feature = jax.random.normal(k5, (n, bs, D_MODEL), jnp.float32)
  encoded_pos = jax.random.normal(k6, (n, bs, D_MODEL), jnp.float32)

  raw_params = init_params(kp)
  packed_params = prepare_params(raw_params, is_first=True)

  out, weights = pos_decoder_layer_forward(
      packed_params, query_tgt, query_pos, query_time_embed, query_sine_embed,
      encoded_feature, encoded_pos)

  jax.block_until_ready(out)
  jax.block_until_ready(weights)
  assert out.shape == (t, b, D_MODEL)
  assert weights.shape == (b, t, t)
  assert bool(jnp.isfinite(out).all())
  # softmax rows averaged over heads must sum to ~1
  assert jnp.allclose(weights.sum(-1), 1.0, atol=1e-3)
  print("KERNEL_OK")
</pallas_src>

<mosaic_0001>
module attributes {stable_mosaic.version = 11 : i64} {
  func.func @_pos_decoder_layer_kernel(%arg0: memref<8x128xf32, #tpu.memory_space<vmem>>, %arg1: memref<128x64xf32, #tpu.memory_space<vmem>>, %arg2: memref<8x128xf32, #tpu.memory_space<vmem>>, %arg3: memref<128x96xbf16, #tpu.memory_space<vmem>>, %arg4: memref<1x96xf32, #tpu.memory_space<vmem>>, %arg5: memref<4x8x32xbf16, #tpu.memory_space<vmem>>, %arg6: memref<1x32xf32, #tpu.memory_space<vmem>>, %arg7: memref<1x32xf32, #tpu.memory_space<vmem>>, %arg8: memref<1x32xf32, #tpu.memory_space<vmem>>, %arg9: memref<32x32xbf16, #tpu.memory_space<vmem>>, %arg10: memref<128x32xbf16, #tpu.memory_space<vmem>>, %arg11: memref<1x32xf32, #tpu.memory_space<vmem>>, %arg12: memref<64x64xbf16, #tpu.memory_space<vmem>>, %arg13: memref<1x64xf32, #tpu.memory_space<vmem>>, %arg14: memref<4x8x32xbf16, #tpu.memory_space<vmem>>, %arg15: memref<1x32xf32, #tpu.memory_space<vmem>>, %arg16: memref<1x32xf32, #tpu.memory_space<vmem>>, %arg17: memref<1x32xf32, #tpu.memory_space<vmem>>, %arg18: memref<32x64xbf16, #tpu.memory_space<vmem>>, %arg19: memref<1x64xf32, #tpu.memory_space<vmem>>, %arg20: memref<64x32xbf16, #tpu.memory_space<vmem>>, %arg21: memref<1x32xf32, #tpu.memory_space<vmem>>, %arg22: memref<1x32xf32, #tpu.memory_space<vmem>>, %arg23: memref<1x32xf32, #tpu.memory_space<vmem>>, %arg24: memref<8x32xf32, #tpu.memory_space<vmem>>, %arg25: memref<8x8xf32, #tpu.memory_space<vmem>>) attributes {dimension_semantics = [], scalar_prefetch = 0 : i64, scratch_operands = 0 : i64, tpu.core_type = #tpu.core_type<tc>} {
    %c0 = arith.constant 0 : index
    %c0_0 = arith.constant 0 : index
    %0 = vector.load %arg0[%c0, %c0_0] : memref<8x128xf32, #tpu.memory_space<vmem>>, vector<8x128xf32>
    %1 = vector.extract_strided_slice %0 {offsets = [0, 0], sizes = [8, 32], strides = [1, 1]} : vector<8x128xf32> to vector<8x32xf32>
    %2 = arith.truncf %0 : vector<8x128xf32> to vector<8x128xbf16>
    %c0_1 = arith.constant 0 : index
    %c0_2 = arith.constant 0 : index
    %3 = vector.load %arg1[%c0_1, %c0_2] : memref<128x64xf32, #tpu.memory_space<vmem>>, vector<128x64xf32>
    %4 = arith.truncf %3 : vector<128x64xf32> to vector<128x64xbf16>
    %c0_3 = arith.constant 0 : index
    %c0_4 = arith.constant 0 : index
    %5 = vector.load %arg3[%c0_3, %c0_4] : memref<128x96xbf16, #tpu.memory_space<vmem>>, vector<128x96xbf16>
    %cst = arith.constant dense<0.000000e+00> : vector<8x96xf32>
    %6 = tpu.matmul %2, %5, %cst {dimension_numbers = #tpu.dot_dimension_numbers<[1], [0], [0], [1], [0, 0, 1, 1], [], []>} : vector<8x128xbf16>, vector<128x96xbf16>, vector<8x96xf32> -> vector<8x96xf32>
    %c0_5 = arith.constant 0 : index
    %c0_6 = arith.constant 0 : index
    %7 = vector.load %arg4[%c0_5, %c0_6] : memref<1x96xf32, #tpu.memory_space<vmem>>, vector<1x96xf32>
    %8 = vector.broadcast %7 : vector<1x96xf32> to vector<8x96xf32>
    %9 = arith.addf %6, %8 : vector<8x96xf32>
    %10 = vector.extract_strided_slice %9 {offsets = [0, 0], sizes = [8, 32], strides = [1, 1]} : vector<8x96xf32> to vector<8x32xf32>
    %11 = vector.extract_strided_slice %9 {offsets = [0, 32], sizes = [8, 32], strides = [1, 1]} : vector<8x96xf32> to vector<8x32xf32>
    %12 = vector.extract_strided_slice %9 {offsets = [0, 64], sizes = [8, 32], strides = [1, 1]} : vector<8x96xf32> to vector<8x32xf32>
    %c0_7 = arith.constant 0 : index
    %c0_8 = arith.constant 0 : index
    %13 = vector.load %arg6[%c0_7, %c0_8] : memref<1x32xf32, #tpu.memory_space<vmem>>, vector<1x32xf32>
    %14 = vector.extract_strided_slice %10 {offsets = [0, 0], sizes = [8, 8], strides = [1, 1]} : vector<8x32xf32> to vector<8x8xf32>
    %15 = arith.truncf %14 : vector<8x8xf32> to vector<8x8xbf16>
    %16 = vector.extract_strided_slice %11 {offsets = [0, 0], sizes = [8, 8], strides = [1, 1]} : vector<8x32xf32> to vector<8x8xf32>
    %17 = arith.truncf %16 : vector<8x8xf32> to vector<8x8xbf16>
    %18 = vector.extract_strided_slice %12 {offsets = [0, 0], sizes = [8, 8], strides = [1, 1]} : vector<8x32xf32> to vector<8x8xf32>
    %19 = arith.truncf %18 : vector<8x8xf32> to vector<8x8xbf16>
    %cst_9 = arith.constant dense<0.000000e+00> : vector<8x8xf32>
    %20 = tpu.matmul %15, %17, %cst_9 {dimension_numbers = #tpu.dot_dimension_numbers<[1], [1], [0], [0], [0, 0, 1, 0], [], []>} : vector<8x8xbf16>, vector<8x8xbf16>, vector<8x8xf32> -> vector<8x8xf32>
    %cst_10 = arith.constant dense<0xFF800000> : vector<8xf32>
    %21 = vector.multi_reduction <maximumf>, %20, %cst_10 [1] : vector<8x8xf32> to vector<8xf32>
    %22 = vector.shape_cast %21 : vector<8xf32> to vector<8x1xf32>
    %23 = vector.broadcast %22 : vector<8x1xf32> to vector<8x8xf32>
    %24 = arith.subf %20, %23 : vector<8x8xf32>
    %25 = math.exp %24 : vector<8x8xf32>
    %cst_11 = arith.constant dense<0.000000e+00> : vector<8xf32>
    %26 = vector.multi_reduction <add>, %25, %cst_11 [1] : vector<8x8xf32> to vector<8xf32>
    %27 = vector.shape_cast %26 : vector<8xf32> to vector<8x1xf32>
    %28 = vector.broadcast %27 : vector<8x1xf32> to vector<8x8xf32>
    %29 = arith.divf %25, %28 : vector<8x8xf32>
    %30 = arith.truncf %29 : vector<8x8xf32> to vector<8x8xbf16>
    %cst_12 = arith.constant dense<0.000000e+00> : vector<8x8xf32>
    %31 = tpu.matmul %30, %19, %cst_12 {dimension_numbers = #tpu.dot_dimension_numbers<[1], [0], [0], [1], [0, 0, 1, 1], [], []>} : vector<8x8xbf16>, vector<8x8xbf16>, vector<8x8xf32> -> vector<8x8xf32>
    %32 = arith.truncf %31 : vector<8x8xf32> to vector<8x8xbf16>
    %c0_13 = arith.constant 0 : index
    %c0_14 = arith.constant 0 : index
    %c0_15 = arith.constant 0 : index
    %33 = vector.load %arg5[%c0_13, %c0_14, %c0_15] : memref<4x8x32xbf16, #tpu.memory_space<vmem>>, vector<1x8x32xbf16>
    %34 = vector.shape_cast %33 : vector<1x8x32xbf16> to vector<8x32xbf16>
    %cst_16 = arith.constant dense<0.000000e+00> : vector<8x32xf32>
    %35 = tpu.matmul %32, %34, %cst_16 {dimension_numbers = #tpu.dot_dimension_numbers<[1], [0], [0], [1], [0, 0, 1, 1], [], []>} : vector<8x8xbf16>, vector<8x32xbf16>, vector<8x32xf32> -> vector<8x32xf32>
    %36 = vector.broadcast %13 : vector<1x32xf32> to vector<8x32xf32>
    %37 = arith.addf %36, %35 : vector<8x32xf32>
    %38 = vector.extract_strided_slice %10 {offsets = [0, 8], sizes = [8, 8], strides = [1, 1]} : vector<8x32xf32> to vector<8x8xf32>
    %39 = arith.truncf %38 : vector<8x8xf32> to vector<8x8xbf16>
    %40 = vector.extract_strided_slice %11 {offsets = [0, 8], sizes = [8, 8], strides = [1, 1]} : vector<8x32xf32> to vector<8x8xf32>
    %41 = arith.truncf %40 : vector<8x8xf32> to vector<8x8xbf16>
    %42 = vector.extract_strided_slice %12 {offsets = [0, 8], sizes = [8, 8], strides = [1, 1]} : vector<8x32xf32> to vector<8x8xf32>
    %43 = arith.truncf %42 : vector<8x8xf32> to vector<8x8xbf16>
    %cst_17 = arith.constant dense<0.000000e+00> : vector<8x8xf32>
    %44 = tpu.matmul %39, %41, %cst_17 {dimension_numbers = #tpu.dot_dimension_numbers<[1], [1], [0], [0], [0, 0, 1, 0], [], []>} : vector<8x8xbf16>, vector<8x8xbf16>, vector<8x8xf32> -> vector<8x8xf32>
    %cst_18 = arith.constant dense<0xFF800000> : vector<8xf32>
    %45 = vector.multi_reduction <maximumf>, %44, %cst_18 [1] : vector<8x8xf32> to vector<8xf32>
    %46 = vector.shape_cast %45 : vector<8xf32> to vector<8x1xf32>
    %47 = vector.broadcast %46 : vector<8x1xf32> to vector<8x8xf32>
    %48 = arith.subf %44, %47 : vector<8x8xf32>
    %49 = math.exp %48 : vector<8x8xf32>
    %cst_19 = arith.constant dense<0.000000e+00> : vector<8xf32>
    %50 = vector.multi_reduction <add>, %49, %cst_19 [1] : vector<8x8xf32> to vector<8xf32>
    %51 = vector.shape_cast %50 : vector<8xf32> to vector<8x1xf32>
    %52 = vector.broadcast %51 : vector<8x1xf32> to vector<8x8xf32>
    %53 = arith.divf %49, %52 : vector<8x8xf32>
    %54 = arith.addf %29, %53 : vector<8x8xf32>
    %55 = arith.truncf %53 : vector<8x8xf32> to vector<8x8xbf16>
    %cst_20 = arith.constant dense<0.000000e+00> : vector<8x8xf32>
    %56 = tpu.matmul %55, %43, %cst_20 {dimension_numbers = #tpu.dot_dimension_numbers<[1], [0], [0], [1], [0, 0, 1, 1], [], []>} : vector<8x8xbf16>, vector<8x8xbf16>, vector<8x8xf32> -> vector<8x8xf32>
    %57 = arith.truncf %56 : vector<8x8xf32> to vector<8x8xbf16>
    %c1 = arith.constant 1 : index
    %c0_21 = arith.constant 0 : index
    %c0_22 = arith.constant 0 : index
    %58 = vector.load %arg5[%c1, %c0_21, %c0_22] : memref<4x8x32xbf16, #tpu.memory_space<vmem>>, vector<1x8x32xbf16>
    %59 = vector.shape_cast %58 : vector<1x8x32xbf16> to vector<8x32xbf16>
    %cst_23 = arith.constant dense<0.000000e+00> : vector<8x32xf32>
    %60 = tpu.matmul %57, %59, %cst_23 {dimension_numbers = #tpu.dot_dimension_numbers<[1], [0], [0], [1], [0, 0, 1, 1], [], []>} : vector<8x8xbf16>, vector<8x32xbf16>, vector<8x32xf32> -> vector<8x32xf32>
    %61 = arith.addf %37, %60 : vector<8x32xf32>
    %62 = vector.extract_strided_slice %10 {offsets = [0, 16], sizes = [8, 8], strides = [1, 1]} : vector<8x32xf32> to vector<8x8xf32>
    %63 = arith.truncf %62 : vector<8x8xf32> to vector<8x8xbf16>
    %64 = vector.extract_strided_slice %11 {offsets = [0, 16], sizes = [8, 8], strides = [1, 1]} : vector<8x32xf32> to vector<8x8xf32>
    %65 = arith.truncf %64 : vector<8x8xf32> to vector<8x8xbf16>
    %66 = vector.extract_strided_slice %12 {offsets = [0, 16], sizes = [8, 8], strides = [1, 1]} : vector<8x32xf32> to vector<8x8xf32>
    %67 = arith.truncf %66 : vector<8x8xf32> to vector<8x8xbf16>
    %cst_24 = arith.constant dense<0.000000e+00> : vector<8x8xf32>
    %68 = tpu.matmul %63, %65, %cst_24 {dimension_numbers = #tpu.dot_dimension_numbers<[1], [1], [0], [0], [0, 0, 1, 0], [], []>} : vector<8x8xbf16>, vector<8x8xbf16>, vector<8x8xf32> -> vector<8x8xf32>
    %cst_25 = arith.constant dense<0xFF800000> : vector<8xf32>
    %69 = vector.multi_reduction <maximumf>, %68, %cst_25 [1] : vector<8x8xf32> to vector<8xf32>
    %70 = vector.shape_cast %69 : vector<8xf32> to vector<8x1xf32>
    %71 = vector.broadcast %70 : vector<8x1xf32> to vector<8x8xf32>
    %72 = arith.subf %68, %71 : vector<8x8xf32>
    %73 = math.exp %72 : vector<8x8xf32>
    %cst_26 = arith.constant dense<0.000000e+00> : vector<8xf32>
    %74 = vector.multi_reduction <add>, %73, %cst_26 [1] : vector<8x8xf32> to vector<8xf32>
    %75 = vector.shape_cast %74 : vector<8xf32> to vector<8x1xf32>
    %76 = vector.broadcast %75 : vector<8x1xf32> to vector<8x8xf32>
    %77 = arith.divf %73, %76 : vector<8x8xf32>
    %78 = arith.addf %54, %77 : vector<8x8xf32>
    %79 = arith.truncf %77 : vector<8x8xf32> to vector<8x8xbf16>
    %cst_27 = arith.constant dense<0.000000e+00> : vector<8x8xf32>
    %80 = tpu.matmul %79, %67, %cst_27 {dimension_numbers = #tpu.dot_dimension_numbers<[1], [0], [0], [1], [0, 0, 1, 1], [], []>} : vector<8x8xbf16>, vector<8x8xbf16>, vector<8x8xf32> -> vector<8x8xf32>
    %81 = arith.truncf %80 : vector<8x8xf32> to vector<8x8xbf16>
    %c2 = arith.constant 2 : index
    %c0_28 = arith.constant 0 : index
    %c0_29 = arith.constant 0 : index
    %82 = vector.load %arg5[%c2, %c0_28, %c0_29] : memref<4x8x32xbf16, #tpu.memory_space<vmem>>, vector<1x8x32xbf16>
    %83 = vector.shape_cast %82 : vector<1x8x32xbf16> to vector<8x32xbf16>
    %cst_30 = arith.constant dense<0.000000e+00> : vector<8x32xf32>
    %84 = tpu.matmul %81, %83, %cst_30 {dimension_numbers = #tpu.dot_dimension_numbers<[1], [0], [0], [1], [0, 0, 1, 1], [], []>} : vector<8x8xbf16>, vector<8x32xbf16>, vector<8x32xf32> -> vector<8x32xf32>
    %85 = arith.addf %61, %84 : vector<8x32xf32>
    %86 = vector.extract_strided_slice %10 {offsets = [0, 24], sizes = [8, 8], strides = [1, 1]} : vector<8x32xf32> to vector<8x8xf32>
    %87 = arith.truncf %86 : vector<8x8xf32> to vector<8x8xbf16>
    %88 = vector.extract_strided_slice %11 {offsets = [0, 24], sizes = [8, 8], strides = [1, 1]} : vector<8x32xf32> to vector<8x8xf32>
    %89 = arith.truncf %88 : vector<8x8xf32> to vector<8x8xbf16>
    %90 = vector.extract_strided_slice %12 {offsets = [0, 24], sizes = [8, 8], strides = [1, 1]} : vector<8x32xf32> to vector<8x8xf32>
    %91 = arith.truncf %90 : vector<8x8xf32> to vector<8x8xbf16>
    %cst_31 = arith.constant dense<0.000000e+00> : vector<8x8xf32>
    %92 = tpu.matmul %87, %89, %cst_31 {dimension_numbers = #tpu.dot_dimension_numbers<[1], [1], [0], [0], [0, 0, 1, 0], [], []>} : vector<8x8xbf16>, vector<8x8xbf16>, vector<8x8xf32> -> vector<8x8xf32>
    %cst_32 = arith.constant dense<0xFF800000> : vector<8xf32>
    %93 = vector.multi_reduction <maximumf>, %92, %cst_32 [1] : vector<8x8xf32> to vector<8xf32>
    %94 = vector.shape_cast %93 : vector<8xf32> to vector<8x1xf32>
    %95 = vector.broadcast %94 : vector<8x1xf32> to vector<8x8xf32>
    %96 = arith.subf %92, %95 : vector<8x8xf32>
    %97 = math.exp %96 : vector<8x8xf32>
    %cst_33 = arith.constant dense<0.000000e+00> : vector<8xf32>
    %98 = vector.multi_reduction <add>, %97, %cst_33 [1] : vector<8x8xf32> to vector<8xf32>
    %99 = vector.shape_cast %98 : vector<8xf32> to vector<8x1xf32>
    %100 = vector.broadcast %99 : vector<8x1xf32> to vector<8x8xf32>
    %101 = arith.divf %97, %100 : vector<8x8xf32>
    %102 = arith.addf %78, %101 : vector<8x8xf32>
    %103 = arith.truncf %101 : vector<8x8xf32> to vector<8x8xbf16>
    %cst_34 = arith.constant dense<0.000000e+00> : vector<8x8xf32>
    %104 = tpu.matmul %103, %91, %cst_34 {dimension_numbers = #tpu.dot_dimension_numbers<[1], [0], [0], [1], [0, 0, 1, 1], [], []>} : vector<8x8xbf16>, vector<8x8xbf16>, vector<8x8xf32> -> vector<8x8xf32>
    %105 = arith.truncf %104 : vector<8x8xf32> to vector<8x8xbf16>
    %c3 = arith.constant 3 : index
    %c0_35 = arith.constant 0 : index
    %c0_36 = arith.constant 0 : index
    %106 = vector.load %arg5[%c3, %c0_35, %c0_36] : memref<4x8x32xbf16, #tpu.memory_space<vmem>>, vector<1x8x32xbf16>
    %107 = vector.shape_cast %106 : vector<1x8x32xbf16> to vector<8x32xbf16>
    %cst_37 = arith.constant dense<0.000000e+00> : vector<8x32xf32>
    %108 = tpu.matmul %105, %107, %cst_37 {dimension_numbers = #tpu.dot_dimension_numbers<[1], [0], [0], [1], [0, 0, 1, 1], [], []>} : vector<8x8xbf16>, vector<8x32xbf16>, vector<8x32xf32> -> vector<8x32xf32>
    %109 = arith.addf %85, %108 : vector<8x32xf32>
    %cst_38 = arith.constant 2.500000e-01 : f32
    %110 = vector.broadcast %cst_38 : f32 to vector<8x8xf32>
    %111 = arith.mulf %102, %110 : vector<8x8xf32>
    %c0_39 = arith.constant 0 : index
    %c0_40 = arith.constant 0 : index
    %112 = vector.load %arg25[%c0_39, %c0_40] : memref<8x8xf32, #tpu.memory_space<vmem>>, vector<8x8xf32>
    tpu.vector_store %arg25[%c0_39, %c0_40], %111 {strides = array<i32>} : memref<8x8xf32, #tpu.memory_space<vmem>>, vector<8x8xf32>,
    %113 = arith.addf %1, %109 : vector<8x32xf32>
    %cst_41 = arith.constant dense<0.000000e+00> : vector<8xf32>
    %114 = vector.multi_reduction <add>, %113, %cst_41 [1] : vector<8x32xf32> to vector<8xf32>
    %115 = vector.shape_cast %114 : vector<8xf32> to vector<8x1xf32>
    %cst_42 = arith.constant 3.200000e+01 : f32
    %116 = vector.broadcast %cst_42 : f32 to vector<8x1xf32>
    %117 = arith.divf %115, %116 : vector<8x1xf32>
    %118 = vector.broadcast %117 : vector<8x1xf32> to vector<8x32xf32>
    %119 = arith.subf %113, %118 : vector<8x32xf32>
    %120 = arith.mulf %119, %119 : vector<8x32xf32>
    %cst_43 = arith.constant dense<0.000000e+00> : vector<8xf32>
    %121 = vector.multi_reduction <add>, %120, %cst_43 [1] : vector<8x32xf32> to vector<8xf32>
    %122 = vector.shape_cast %121 : vector<8xf32> to vector<8x1xf32>
    %cst_44 = arith.constant 3.200000e+01 : f32
    %123 = vector.broadcast %cst_44 : f32 to vector<8x1xf32>
    %124 = arith.divf %122, %123 : vector<8x1xf32>
    %cst_45 = arith.constant 9.99999974E-6 : f32
    %125 = vector.broadcast %cst_45 : f32 to vector<8x1xf32>
    %126 = arith.addf %124, %125 : vector<8x1xf32>
    %127 = math.rsqrt %126 : vector<8x1xf32>
    %128 = vector.broadcast %127 : vector<8x1xf32> to vector<8x32xf32>
    %129 = arith.mulf %119, %128 : vector<8x32xf32>
    %c0_46 = arith.constant 0 : index
    %c0_47 = arith.constant 0 : index
    %130 = vector.load %arg7[%c0_46, %c0_47] : memref<1x32xf32, #tpu.memory_space<vmem>>, vector<1x32xf32>
    %131 = vector.broadcast %130 : vector<1x32xf32> to vector<8x32xf32>
    %132 = arith.mulf %129, %131 : vector<8x32xf32>
    %c0_48 = arith.constant 0 : index
    %c0_49 = arith.constant 0 : index
    %133 = vector.load %arg8[%c0_48, %c0_49] : memref<1x32xf32, #tpu.memory_space<vmem>>, vector<1x32xf32>
    %134 = vector.broadcast %133 : vector<1x32xf32> to vector<8x32xf32>
    %135 = arith.addf %132, %134 : vector<8x32xf32>
    %136 = arith.truncf %135 : vector<8x32xf32> to vector<8x32xbf16>
    %c0_50 = arith.constant 0 : index
    %c0_51 = arith.constant 0 : index
    %137 = vector.load %arg9[%c0_50, %c0_51] : memref<32x32xbf16, #tpu.memory_space<vmem>>, vector<32x32xbf16>
    %cst_52 = arith.constant dense<0.000000e+00> : vector<8x32xf32>
    %138 = tpu.matmul %136, %137, %cst_52 {dimension_numbers = #tpu.dot_dimension_numbers<[1], [0], [0], [1], [0, 0, 1, 1], [], []>} : vector<8x32xbf16>, vector<32x32xbf16>, vector<8x32xf32> -> vector<8x32xf32>
    %c0_53 = arith.constant 0 : index
    %c0_54 = arith.constant 0 : index
    %139 = vector.load %arg10[%c0_53, %c0_54] : memref<128x32xbf16, #tpu.memory_space<vmem>>, vector<128x32xbf16>
    %cst_55 = arith.constant dense<0.000000e+00> : vector<8x32xf32>
    %140 = tpu.matmul %2, %139, %cst_55 {dimension_numbers = #tpu.dot_dimension_numbers<[1], [0], [0], [1], [0, 0, 1, 1], [], []>} : vector<8x128xbf16>, vector<128x32xbf16>, vector<8x32xf32> -> vector<8x32xf32>
    %141 = arith.addf %138, %140 : vector<8x32xf32>
    %c0_56 = arith.constant 0 : index
    %c0_57 = arith.constant 0 : index
    %142 = vector.load %arg11[%c0_56, %c0_57] : memref<1x32xf32, #tpu.memory_space<vmem>>, vector<1x32xf32>
    %143 = vector.broadcast %142 : vector<1x32xf32> to vector<8x32xf32>
    %144 = arith.addf %141, %143 : vector<8x32xf32>
    %c0_58 = arith.constant 0 : index
    %c0_59 = arith.constant 0 : index
    %145 = vector.load %arg12[%c0_58, %c0_59] : memref<64x64xbf16, #tpu.memory_space<vmem>>, vector<64x64xbf16>
    %cst_60 = arith.constant dense<0.000000e+00> : vector<128x64xf32>
    %146 = tpu.matmul %4, %145, %cst_60 {dimension_numbers = #tpu.dot_dimension_numbers<[1], [0], [0], [1], [0, 0, 1, 1], [], []>} : vector<128x64xbf16>, vector<64x64xbf16>, vector<128x64xf32> -> vector<128x64xf32>
    %c0_61 = arith.constant 0 : index
    %c0_62 = arith.constant 0 : index
    %147 = vector.load %arg13[%c0_61, %c0_62] : memref<1x64xf32, #tpu.memory_space<vmem>>, vector<1x64xf32>
    %148 = vector.broadcast %147 : vector<1x64xf32> to vector<128x64xf32>
    %149 = arith.addf %146, %148 : vector<128x64xf32>
    %150 = vector.extract_strided_slice %149 {offsets = [0, 0], sizes = [128, 32], strides = [1, 1]} : vector<128x64xf32> to vector<128x32xf32>
    %151 = vector.extract_strided_slice %149 {offsets = [0, 32], sizes = [128, 32], strides = [1, 1]} : vector<128x64xf32> to vector<128x32xf32>
    %c0_63 = arith.constant 0 : index
    %c0_64 = arith.constant 0 : index
    %152 = vector.load %arg2[%c0_63, %c0_64] : memref<8x128xf32, #tpu.memory_space<vmem>>, vector<8x128xf32>
    %c0_65 = arith.constant 0 : index
    %c0_66 = arith.constant 0 : index
    %153 = vector.load %arg15[%c0_65, %c0_66] : memref<1x32xf32, #tpu.memory_space<vmem>>, vector<1x32xf32>
    %154 = vector.extract_strided_slice %144 {offsets = [0, 0], sizes = [8, 8], strides = [1, 1]} : vector<8x32xf32> to vector<8x8xf32>
    %155 = arith.truncf %154 : vector<8x8xf32> to vector<8x8xbf16>
    %156 = vector.extract_strided_slice %150 {offsets = [0, 0], sizes = [128, 8], strides = [1, 1]} : vector<128x32xf32> to vector<128x8xf32>
    %157 = arith.truncf %156 : vector<128x8xf32> to vector<128x8xbf16>
    %158 = vector.extract_strided_slice %151 {offsets = [0, 0], sizes = [128, 8], strides = [1, 1]} : vector<128x32xf32> to vector<128x8xf32>
    %159 = arith.truncf %158 : vector<128x8xf32> to vector<128x8xbf16>
    %cst_67 = arith.constant dense<0.000000e+00> : vector<8x128xf32>
    %160 = tpu.matmul %155, %157, %cst_67 {dimension_numbers = #tpu.dot_dimension_numbers<[1], [1], [0], [0], [0, 0, 1, 0], [], []>} : vector<8x8xbf16>, vector<128x8xbf16>, vector<8x128xf32> -> vector<8x128xf32>
    %161 = arith.addf %160, %152 : vector<8x128xf32>
    %cst_68 = arith.constant dense<0xFF800000> : vector<8xf32>
    %162 = vector.multi_reduction <maximumf>, %161, %cst_68 [1] : vector<8x128xf32> to vector<8xf32>
    %163 = vector.shape_cast %162 : vector<8xf32> to vector<8x1xf32>
    %164 = vector.broadcast %163 : vector<8x1xf32> to vector<8x128xf32>
    %165 = arith.subf %161, %164 : vector<8x128xf32>
    %166 = math.exp %165 : vector<8x128xf32>
    %cst_69 = arith.constant dense<0.000000e+00> : vector<8xf32>
    %167 = vector.multi_reduction <add>, %166, %cst_69 [1] : vector<8x128xf32> to vector<8xf32>
    %168 = vector.shape_cast %167 : vector<8xf32> to vector<8x1xf32>
    %169 = vector.broadcast %168 : vector<8x1xf32> to vector<8x128xf32>
    %170 = arith.divf %166, %169 : vector<8x128xf32>
    %171 = arith.truncf %170 : vector<8x128xf32> to vector<8x128xbf16>
    %cst_70 = arith.constant dense<0.000000e+00> : vector<8x8xf32>
    %172 = tpu.matmul %171, %159, %cst_70 {dimension_numbers = #tpu.dot_dimension_numbers<[1], [0], [0], [1], [0, 0, 1, 1], [], []>} : vector<8x128xbf16>, vector<128x8xbf16>, vector<8x8xf32> -> vector<8x8xf32>
    %173 = arith.truncf %172 : vector<8x8xf32> to vector<8x8xbf16>
    %c0_71 = arith.constant 0 : index
    %c0_72 = arith.constant 0 : index
    %c0_73 = arith.constant 0 : index
    %174 = vector.load %arg14[%c0_71, %c0_72, %c0_73] : memref<4x8x32xbf16, #tpu.memory_space<vmem>>, vector<1x8x32xbf16>
    %175 = vector.shape_cast %174 : vector<1x8x32xbf16> to vector<8x32xbf16>
    %cst_74 = arith.constant dense<0.000000e+00> : vector<8x32xf32>
    %176 = tpu.matmul %173, %175, %cst_74 {dimension_numbers = #tpu.dot_dimension_numbers<[1], [0], [0], [1], [0, 0, 1, 1], [], []>} : vector<8x8xbf16>, vector<8x32xbf16>, vector<8x32xf32> -> vector<8x32xf32>
    %177 = vector.broadcast %153 : vector<1x32xf32> to vector<8x32xf32>
    %178 = arith.addf %177, %176 : vector<8x32xf32>
    %179 = vector.extract_strided_slice %144 {offsets = [0, 8], sizes = [8, 8], strides = [1, 1]} : vector<8x32xf32> to vector<8x8xf32>
    %180 = arith.truncf %179 : vector<8x8xf32> to vector<8x8xbf16>
    %181 = vector.extract_strided_slice %150 {offsets = [0, 8], sizes = [128, 8], strides = [1, 1]} : vector<128x32xf32> to vector<128x8xf32>
    %182 = arith.truncf %181 : vector<128x8xf32> to vector<128x8xbf16>
    %183 = vector.extract_strided_slice %151 {offsets = [0, 8], sizes = [128, 8], strides = [1, 1]} : vector<128x32xf32> to vector<128x8xf32>
    %184 = arith.truncf %183 : vector<128x8xf32> to vector<128x8xbf16>
    %cst_75 = arith.constant dense<0.000000e+00> : vector<8x128xf32>
    %185 = tpu.matmul %180, %182, %cst_75 {dimension_numbers = #tpu.dot_dimension_numbers<[1], [1], [0], [0], [0, 0, 1, 0], [], []>} : vector<8x8xbf16>, vector<128x8xbf16>, vector<8x128xf32> -> vector<8x128xf32>
    %186 = arith.addf %185, %152 : vector<8x128xf32>
    %cst_76 = arith.constant dense<0xFF800000> : vector<8xf32>
    %187 = vector.multi_reduction <maximumf>, %186, %cst_76 [1] : vector<8x128xf32> to vector<8xf32>
    %188 = vector.shape_cast %187 : vector<8xf32> to vector<8x1xf32>
    %189 = vector.broadcast %188 : vector<8x1xf32> to vector<8x128xf32>
    %190 = arith.subf %186, %189 : vector<8x128xf32>
    %191 = math.exp %190 : vector<8x128xf32>
    %cst_77 = arith.constant dense<0.000000e+00> : vector<8xf32>
    %192 = vector.multi_reduction <add>, %191, %cst_77 [1] : vector<8x128xf32> to vector<8xf32>
    %193 = vector.shape_cast %192 : vector<8xf32> to vector<8x1xf32>
    %194 = vector.broadcast %193 : vector<8x1xf32> to vector<8x128xf32>
    %195 = arith.divf %191, %194 : vector<8x128xf32>
    %196 = arith.truncf %195 : vector<8x128xf32> to vector<8x128xbf16>
    %cst_78 = arith.constant dense<0.000000e+00> : vector<8x8xf32>
    %197 = tpu.matmul %196, %184, %cst_78 {dimension_numbers = #tpu.dot_dimension_numbers<[1], [0], [0], [1], [0, 0, 1, 1], [], []>} : vector<8x128xbf16>, vector<128x8xbf16>, vector<8x8xf32> -> vector<8x8xf32>
    %198 = arith.truncf %197 : vector<8x8xf32> to vector<8x8xbf16>
    %c1_79 = arith.constant 1 : index
    %c0_80 = arith.constant 0 : index
    %c0_81 = arith.constant 0 : index
    %199 = vector.load %arg14[%c1_79, %c0_80, %c0_81] : memref<4x8x32xbf16, #tpu.memory_space<vmem>>, vector<1x8x32xbf16>
    %200 = vector.shape_cast %199 : vector<1x8x32xbf16> to vector<8x32xbf16>
    %cst_82 = arith.constant dense<0.000000e+00> : vector<8x32xf32>
    %201 = tpu.matmul %198, %200, %cst_82 {dimension_numbers = #tpu.dot_dimension_numbers<[1], [0], [0], [1], [0, 0, 1, 1], [], []>} : vector<8x8xbf16>, vector<8x32xbf16>, vector<8x32xf32> -> vector<8x32xf32>
    %202 = arith.addf %178, %201 : vector<8x32xf32>
    %203 = vector.extract_strided_slice %144 {offsets = [0, 16], sizes = [8, 8], strides = [1, 1]} : vector<8x32xf32> to vector<8x8xf32>
    %204 = arith.truncf %203 : vector<8x8xf32> to vector<8x8xbf16>
    %205 = vector.extract_strided_slice %150 {offsets = [0, 16], sizes = [128, 8], strides = [1, 1]} : vector<128x32xf32> to vector<128x8xf32>
    %206 = arith.truncf %205 : vector<128x8xf32> to vector<128x8xbf16>
    %207 = vector.extract_strided_slice %151 {offsets = [0, 16], sizes = [128, 8], strides = [1, 1]} : vector<128x32xf32> to vector<128x8xf32>
    %208 = arith.truncf %207 : vector<128x8xf32> to vector<128x8xbf16>
    %cst_83 = arith.constant dense<0.000000e+00> : vector<8x128xf32>
    %209 = tpu.matmul %204, %206, %cst_83 {dimension_numbers = #tpu.dot_dimension_numbers<[1], [1], [0], [0], [0, 0, 1, 0], [], []>} : vector<8x8xbf16>, vector<128x8xbf16>, vector<8x128xf32> -> vector<8x128xf32>
    %210 = arith.addf %209, %152 : vector<8x128xf32>
    %cst_84 = arith.constant dense<0xFF800000> : vector<8xf32>
    %211 = vector.multi_reduction <maximumf>, %210, %cst_84 [1] : vector<8x128xf32> to vector<8xf32>
    %212 = vector.shape_cast %211 : vector<8xf32> to vector<8x1xf32>
    %213 = vector.broadcast %212 : vector<8x1xf32> to vector<8x128xf32>
    %214 = arith.subf %210, %213 : vector<8x128xf32>
    %215 = math.exp %214 : vector<8x128xf32>
    %cst_85 = arith.constant dense<0.000000e+00> : vector<8xf32>
    %216 = vector.multi_reduction <add>, %215, %cst_85 [1] : vector<8x128xf32> to vector<8xf32>
    %217 = vector.shape_cast %216 : vector<8xf32> to vector<8x1xf32>
    %218 = vector.broadcast %217 : vector<8x1xf32> to vector<8x128xf32>
    %219 = arith.divf %215, %218 : vector<8x128xf32>
    %220 = arith.truncf %219 : vector<8x128xf32> to vector<8x128xbf16>
    %cst_86 = arith.constant dense<0.000000e+00> : vector<8x8xf32>
    %221 = tpu.matmul %220, %208, %cst_86 {dimension_numbers = #tpu.dot_dimension_numbers<[1], [0], [0], [1], [0, 0, 1, 1], [], []>} : vector<8x128xbf16>, vector<128x8xbf16>, vector<8x8xf32> -> vector<8x8xf32>
    %222 = arith.truncf %221 : vector<8x8xf32> to vector<8x8xbf16>
    %c2_87 = arith.constant 2 : index
    %c0_88 = arith.constant 0 : index
    %c0_89 = arith.constant 0 : index
    %223 = vector.load %arg14[%c2_87, %c0_88, %c0_89] : memref<4x8x32xbf16, #tpu.memory_space<vmem>>, vector<1x8x32xbf16>
    %224 = vector.shape_cast %223 : vector<1x8x32xbf16> to vector<8x32xbf16>
    %cst_90 = arith.constant dense<0.000000e+00> : vector<8x32xf32>
    %225 = tpu.matmul %222, %224, %cst_90 {dimension_numbers = #tpu.dot_dimension_numbers<[1], [0], [0], [1], [0, 0, 1, 1], [], []>} : vector<8x8xbf16>, vector<8x32xbf16>, vector<8x32xf32> -> vector<8x32xf32>
    %226 = arith.addf %202, %225 : vector<8x32xf32>
    %227 = vector.extract_strided_slice %144 {offsets = [0, 24], sizes = [8, 8], strides = [1, 1]} : vector<8x32xf32> to vector<8x8xf32>
    %228 = arith.truncf %227 : vector<8x8xf32> to vector<8x8xbf16>
    %229 = vector.extract_strided_slice %150 {offsets = [0, 24], sizes = [128, 8], strides = [1, 1]} : vector<128x32xf32> to vector<128x8xf32>
    %230 = arith.truncf %229 : vector<128x8xf32> to vector<128x8xbf16>
    %231 = vector.extract_strided_slice %151 {offsets = [0, 24], sizes = [128, 8], strides = [1, 1]} : vector<128x32xf32> to vector<128x8xf32>
    %232 = arith.truncf %231 : vector<128x8xf32> to vector<128x8xbf16>
    %cst_91 = arith.constant dense<0.000000e+00> : vector<8x128xf32>
    %233 = tpu.matmul %228, %230, %cst_91 {dimension_numbers = #tpu.dot_dimension_numbers<[1], [1], [0], [0], [0, 0, 1, 0], [], []>} : vector<8x8xbf16>, vector<128x8xbf16>, vector<8x128xf32> -> vector<8x128xf32>
    %234 = arith.addf %233, %152 : vector<8x128xf32>
    %cst_92 = arith.constant dense<0xFF800000> : vector<8xf32>
    %235 = vector.multi_reduction <maximumf>, %234, %cst_92 [1] : vector<8x128xf32> to vector<8xf32>
    %236 = vector.shape_cast %235 : vector<8xf32> to vector<8x1xf32>
    %237 = vector.broadcast %236 : vector<8x1xf32> to vector<8x128xf32>
    %238 = arith.subf %234, %237 : vector<8x128xf32>
    %239 = math.exp %238 : vector<8x128xf32>
    %cst_93 = arith.constant dense<0.000000e+00> : vector<8xf32>
    %240 = vector.multi_reduction <add>, %239, %cst_93 [1] : vector<8x128xf32> to vector<8xf32>
    %241 = vector.shape_cast %240 : vector<8xf32> to vector<8x1xf32>
    %242 = vector.broadcast %241 : vector<8x1xf32> to vector<8x128xf32>
    %243 = arith.divf %239, %242 : vector<8x128xf32>
    %244 = arith.truncf %243 : vector<8x128xf32> to vector<8x128xbf16>
    %cst_94 = arith.constant dense<0.000000e+00> : vector<8x8xf32>
    %245 = tpu.matmul %244, %232, %cst_94 {dimension_numbers = #tpu.dot_dimension_numbers<[1], [0], [0], [1], [0, 0, 1, 1], [], []>} : vector<8x128xbf16>, vector<128x8xbf16>, vector<8x8xf32> -> vector<8x8xf32>
    %246 = arith.truncf %245 : vector<8x8xf32> to vector<8x8xbf16>
    %c3_95 = arith.constant 3 : index
    %c0_96 = arith.constant 0 : index
    %c0_97 = arith.constant 0 : index
    %247 = vector.load %arg14[%c3_95, %c0_96, %c0_97] : memref<4x8x32xbf16, #tpu.memory_space<vmem>>, vector<1x8x32xbf16>
    %248 = vector.shape_cast %247 : vector<1x8x32xbf16> to vector<8x32xbf16>
    %cst_98 = arith.constant dense<0.000000e+00> : vector<8x32xf32>
    %249 = tpu.matmul %246, %248, %cst_98 {dimension_numbers = #tpu.dot_dimension_numbers<[1], [0], [0], [1], [0, 0, 1, 1], [], []>} : vector<8x8xbf16>, vector<8x32xbf16>, vector<8x32xf32> -> vector<8x32xf32>
    %250 = arith.addf %226, %249 : vector<8x32xf32>
    %251 = arith.addf %135, %250 : vector<8x32xf32>
    %cst_99 = arith.constant dense<0.000000e+00> : vector<8xf32>
    %252 = vector.multi_reduction <add>, %251, %cst_99 [1] : vector<8x32xf32> to vector<8xf32>
    %253 = vector.shape_cast %252 : vector<8xf32> to vector<8x1xf32>
    %cst_100 = arith.constant 3.200000e+01 : f32
    %254 = vector.broadcast %cst_100 : f32 to vector<8x1xf32>
    %255 = arith.divf %253, %254 : vector<8x1xf32>
    %256 = vector.broadcast %255 : vector<8x1xf32> to vector<8x32xf32>
    %257 = arith.subf %251, %256 : vector<8x32xf32>
    %258 = arith.mulf %257, %257 : vector<8x32xf32>
    %cst_101 = arith.constant dense<0.000000e+00> : vector<8xf32>
    %259 = vector.multi_reduction <add>, %258, %cst_101 [1] : vector<8x32xf32> to vector<8xf32>
    %260 = vector.shape_cast %259 : vector<8xf32> to vector<8x1xf32>
    %cst_102 = arith.constant 3.200000e+01 : f32
    %261 = vector.broadcast %cst_102 : f32 to vector<8x1xf32>
    %262 = arith.divf %260, %261 : vector<8x1xf32>
    %cst_103 = arith.constant 9.99999974E-6 : f32
    %263 = vector.broadcast %cst_103 : f32 to vector<8x1xf32>
    %264 = arith.addf %262, %263 : vector<8x1xf32>
    %265 = math.rsqrt %264 : vector<8x1xf32>
    %266 = vector.broadcast %265 : vector<8x1xf32> to vector<8x32xf32>
    %267 = arith.mulf %257, %266 : vector<8x32xf32>
    %c0_104 = arith.constant 0 : index
    %c0_105 = arith.constant 0 : index
    %268 = vector.load %arg16[%c0_104, %c0_105] : memref<1x32xf32, #tpu.memory_space<vmem>>, vector<1x32xf32>
    %269 = vector.broadcast %268 : vector<1x32xf32> to vector<8x32xf32>
    %270 = arith.mulf %267, %269 : vector<8x32xf32>
    %c0_106 = arith.constant 0 : index
    %c0_107 = arith.constant 0 : index
    %271 = vector.load %arg17[%c0_106, %c0_107] : memref<1x32xf32, #tpu.memory_space<vmem>>, vector<1x32xf32>
    %272 = vector.broadcast %271 : vector<1x32xf32> to vector<8x32xf32>
    %273 = arith.addf %270, %272 : vector<8x32xf32>
    %274 = arith.truncf %273 : vector<8x32xf32> to vector<8x32xbf16>
    %c0_108 = arith.constant 0 : index
    %c0_109 = arith.constant 0 : index
    %275 = vector.load %arg18[%c0_108, %c0_109] : memref<32x64xbf16, #tpu.memory_space<vmem>>, vector<32x64xbf16>
    %cst_110 = arith.constant dense<0.000000e+00> : vector<8x64xf32>
    %276 = tpu.matmul %274, %275, %cst_110 {dimension_numbers = #tpu.dot_dimension_numbers<[1], [0], [0], [1], [0, 0, 1, 1], [], []>} : vector<8x32xbf16>, vector<32x64xbf16>, vector<8x64xf32> -> vector<8x64xf32>
    %c0_111 = arith.constant 0 : index
    %c0_112 = arith.constant 0 : index
    %277 = vector.load %arg19[%c0_111, %c0_112] : memref<1x64xf32, #tpu.memory_space<vmem>>, vector<1x64xf32>
    %278 = vector.broadcast %277 : vector<1x64xf32> to vector<8x64xf32>
    %279 = arith.addf %276, %278 : vector<8x64xf32>
    %cst_113 = arith.constant 0.000000e+00 : f32
    %280 = vector.broadcast %cst_113 : f32 to vector<8x64xf32>
    %281 = arith.maximumf %279, %280 : vector<8x64xf32>
    %282 = arith.truncf %281 : vector<8x64xf32> to vector<8x64xbf16>
    %c0_114 = arith.constant 0 : index
    %c0_115 = arith.constant 0 : index
    %283 = vector.load %arg20[%c0_114, %c0_115] : memref<64x32xbf16, #tpu.memory_space<vmem>>, vector<64x32xbf16>
    %cst_116 = arith.constant dense<0.000000e+00> : vector<8x32xf32>
    %284 = tpu.matmul %282, %283, %cst_116 {dimension_numbers = #tpu.dot_dimension_numbers<[1], [0], [0], [1], [0, 0, 1, 1], [], []>} : vector<8x64xbf16>, vector<64x32xbf16>, vector<8x32xf32> -> vector<8x32xf32>
    %c0_117 = arith.constant 0 : index
    %c0_118 = arith.constant 0 : index
    %285 = vector.load %arg21[%c0_117, %c0_118] : memref<1x32xf32, #tpu.memory_space<vmem>>, vector<1x32xf32>
    %286 = vector.broadcast %285 : vector<1x32xf32> to vector<8x32xf32>
    %287 = arith.addf %284, %286 : vector<8x32xf32>
    %288 = arith.addf %273, %287 : vector<8x32xf32>
    %cst_119 = arith.constant dense<0.000000e+00> : vector<8xf32>
    %289 = vector.multi_reduction <add>, %288, %cst_119 [1] : vector<8x32xf32> to vector<8xf32>
    %290 = vector.shape_cast %289 : vector<8xf32> to vector<8x1xf32>
    %cst_120 = arith.constant 3.200000e+01 : f32
    %291 = vector.broadcast %cst_120 : f32 to vector<8x1xf32>
    %292 = arith.divf %290, %291 : vector<8x1xf32>
    %293 = vector.broadcast %292 : vector<8x1xf32> to vector<8x32xf32>
    %294 = arith.subf %288, %293 : vector<8x32xf32>
    %295 = arith.mulf %294, %294 : vector<8x32xf32>
    %cst_121 = arith.constant dense<0.000000e+00> : vector<8xf32>
    %296 = vector.multi_reduction <add>, %295, %cst_121 [1] : vector<8x32xf32> to vector<8xf32>
    %297 = vector.shape_cast %296 : vector<8xf32> to vector<8x1xf32>
    %cst_122 = arith.constant 3.200000e+01 : f32
    %298 = vector.broadcast %cst_122 : f32 to vector<8x1xf32>
    %299 = arith.divf %297, %298 : vector<8x1xf32>
    %cst_123 = arith.constant 9.99999974E-6 : f32
    %300 = vector.broadcast %cst_123 : f32 to vector<8x1xf32>
    %301 = arith.addf %299, %300 : vector<8x1xf32>
    %302 = math.rsqrt %301 : vector<8x1xf32>
    %303 = vector.broadcast %302 : vector<8x1xf32> to vector<8x32xf32>
    %304 = arith.mulf %294, %303 : vector<8x32xf32>
    %c0_124 = arith.constant 0 : index
    %c0_125 = arith.constant 0 : index
    %305 = vector.load %arg22[%c0_124, %c0_125] : memref<1x32xf32, #tpu.memory_space<vmem>>, vector<1x32xf32>
    %306 = vector.broadcast %305 : vector<1x32xf32> to vector<8x32xf32>
    %307 = arith.mulf %304, %306 : vector<8x32xf32>
    %c0_126 = arith.constant 0 : index
    %c0_127 = arith.constant 0 : index
    %308 = vector.load %arg23[%c0_126, %c0_127] : memref<1x32xf32, #tpu.memory_space<vmem>>, vector<1x32xf32>
    %309 = vector.broadcast %308 : vector<1x32xf32> to vector<8x32xf32>
    %310 = arith.addf %307, %309 : vector<8x32xf32>
    %c0_128 = arith.constant 0 : index
    %c0_129 = arith.constant 0 : index
    %311 = vector.load %arg24[%c0_128, %c0_129] : memref<8x32xf32, #tpu.memory_space<vmem>>, vector<8x32xf32>
    tpu.vector_store %arg24[%c0_128, %c0_129], %310 {strides = array<i32>} : memref<8x32xf32, #tpu.memory_space<vmem>>, vector<8x32xf32>,
    return
  }
}

</mosaic_0001>

<bundles_post_ra>
// kernel: pos_decoder_layer_forward.1
= control target key start
LH: loop header
LB: loop body
LE: loop exit
PB: predicated region body
PF: predicated region fallthrough
CT: control target
= control target key end

     0   :  { %s3856_s0 = inlined_call_operand.vmem [shape: f32[8,128], index: 0, kind: input, shape index: {}]   ;;  %s3857_s1 = inlined_call_operand.vmem [shape: f32[128,64], index: 1, kind: input, shape index: {}]   ;;  %s3858_s2 = inlined_call_operand.vmem [shape: f32[8,128], index: 2, kind: input, shape index: {}]   ;;  %s3859_s3 = inlined_call_operand.vmem [shape: bf16[128,96], index: 3, kind: input, shape index: {}]   ;;  %s3860_s4 = inlined_call_operand.vmem [shape: f32[1,96], index: 4, kind: input, shape index: {}]   ;;  %s3861_s5 = inlined_call_operand.vmem [shape: bf16[4,8,32], index: 5, kind: input, shape index: {}]   ;;  %s3862_s6 = inlined_call_operand.vmem [shape: f32[1,32], index: 6, kind: input, shape index: {}]   ;;  %s3863_s7 = inlined_call_operand.vmem [shape: f32[1,32], index: 7, kind: input, shape index: {}]   ;;  %s3864_s8 = inlined_call_operand.vmem [shape: f32[1,32], index: 8, kind: input, shape index: {}]   ;;  %s3865_s9 = inlined_call_operand.vmem [shape: bf16[32,32], index: 9, kind: input, shape index: {}]   ;;  %s3866_s10 = inlined_call_operand.vmem [shape: bf16[128,32], index: 10, kind: input, shape index: {}]   ;;  %s3867_s11 = inlined_call_operand.vmem [shape: f32[1,32], index: 11, kind: input, shape index: {}]   ;;  %s3868_s12 = inlined_call_operand.vmem [shape: bf16[64,64], index: 12, kind: input, shape index: {}]   ;;  %s3869_s13 = inlined_call_operand.vmem [shape: f32[1,64], index: 13, kind: input, shape index: {}]   ;;  %s3870_s14 = inlined_call_operand.vmem [shape: bf16[4,8,32], index: 14, kind: input, shape index: {}]   ;;  %s3871_s15 = inlined_call_operand.vmem [shape: f32[1,32], index: 15, kind: input, shape index: {}]   ;;  %s3872_s16 = inlined_call_operand.vmem [shape: f32[1,32], index: 16, kind: input, shape index: {}]   ;;  %s3873_s17 = inlined_call_operand.vmem [shape: f32[1,32], index: 17, kind: input, shape index: {}]   ;;  %s3874_s18 = inlined_call_operand.vmem [shape: bf16[32,64], index: 18, kind: input, shape index: {}]   ;;  %s3875_s19 = inlined_call_operand.vmem [shape: f32[1,64], index: 19, kind: input, shape index: {}]   ;;  %s3876_s20 = inlined_call_operand.vmem [shape: bf16[64,32], index: 20, kind: input, shape index: {}]   ;;  %s3877_s21 = inlined_call_operand.vmem [shape: f32[1,32], index: 21, kind: input, shape index: {}]   ;;  %s3878_s22 = inlined_call_operand.vmem [shape: f32[1,32], index: 22, kind: input, shape index: {}]   ;;  %s3879_s23 = inlined_call_operand.vmem [shape: f32[1,32], index: 23, kind: input, shape index: {}]   ;;  %s3880_s24 = inlined_call_operand.hbm [shape: f32[8,32], index: 24, kind: output, shape index: {0}]   ;;  %s3881_s25 = inlined_call_operand.hbm [shape: f32[8,8], index: 25, kind: output, shape index: {1}]  }
   0x1   :  { %3890 = sst [smem:[#allocation8_spill]] %s3856_s0 }
   0x2   :  { %3891 = sst [smem:[#allocation9_spill]] %s3857_s1 }
   0x3   :  { %3892 = sst [smem:[#allocation10_spill]] %s3858_s2 }
   0x4   :  { %3893 = sst [smem:[#allocation11_spill]] %s3859_s3 }
   0x5   :  { %3894 = sst [smem:[#allocation12_spill]] %s3860_s4 }
   0x6   :  { %3895 = sst [smem:[#allocation13_spill]] %s3861_s5 }
   0x7   :  { %3896 = sst [smem:[#allocation14_spill]] %s3862_s6 }
   0x8   :  { %3897 = sst [smem:[#allocation15_spill]] %s3863_s7 }
   0x9   :  { %3898 = sst [smem:[#allocation16_spill]] %s3864_s8 }
   0xa   :  { %3899 = sst [smem:[#allocation17_spill]] %s3865_s9 }
   0xb   :  { %31 = vsyncpa [#allocation3], 0  ;;  %s3900_s6 = sld [smem:[#allocation11_spill]]  ;;  %v3020_v1 = vmov 0.0   ;;  %vm3021_vm0 = vmmov 0  }
   0xc   :  { %2543 = vmatprep.subr.bf16.mxu0 %v3020_v1  ;;  %2563 = vmatprep.subr.bf16.mxu1 %v3020_v1 }
   0xd   :  { %2559 = vmatprep.mubr.msk.bf16.mxu0 %vm3021_vm0, %v3020_v1  ;;  %2565 = vmatprep.mubr.msk.bf16.mxu1 %vm3021_vm0, %v3020_v1 }
  0x11   :  { %v2906_v0 = vld [vmem:[%s3900_s6] sm:$0xff]   ;;  %v2907_v2 = vld [vmem:[%s3900_s6 + $0x8] sm:$0xff]   ;;  %v2908_v3 = vld [vmem:[%s3900_s6 + $0x10] sm:$0xff]  }
  0x12   :  { %2544 = vmatpush3.bf16.msra.mxu0 %v2906_v0  ;;  %v2909_v4 = vld [vmem:[%s3900_s6 + $0x18] sm:$0xff]   ;;  %v2910_v5 = vld [vmem:[%s3900_s6 + $0x20] sm:$0xff]   ;;  %v2911_v6 = vld [vmem:[%s3900_s6 + $0x28] sm:$0xff]  }
  0x13   :  { %2545 = vmatprep.subr.bf16.mxu0 %v3020_v1  ;;  %v2912_v7 = vld [vmem:[%s3900_s6 + $0x30] sm:$0xff]  }
  0x16   :  { %2546 = vmatpush3.bf16.msra.mxu0 %v2907_v2 }
  0x17   :  { %2547 = vmatprep.subr.bf16.mxu0 %v3020_v1 }
  0x1a   :  { %2548 = vmatpush3.bf16.msra.mxu0 %v2908_v3 }
  0x1b   :  { %2549 = vmatprep.subr.bf16.mxu0 %v3020_v1 }
  0x1e   :  { %2550 = vmatpush3.bf16.msra.mxu0 %v2909_v4 }
  0x1f   :  { %2551 = vmatprep.subr.bf16.mxu0 %v3020_v1 }
  0x22   :  { %2552 = vmatpush3.bf16.msra.mxu0 %v2910_v5 }
  0x23   :  { %2553 = vmatprep.subr.bf16.mxu0 %v3020_v1 }
  0x26   :  { %2554 = vmatpush3.bf16.msra.mxu0 %v2911_v6 }
  0x27   :  { %32 = vsyncpa [#allocation5], 0  ;;  %2555 = vmatprep.subr.bf16.mxu0 %v3020_v1  ;;  %v2913_v8 = vld [vmem:[%s3900_s6 + $0x38] sm:$0xff]   ;;  %s3901_s3 = sld [smem:[#allocation8_spill]]  ;;  %s3902_s1 = sld [smem:[#allocation12_spill]]  ;;  %vm224_vm1 = vcmask 64512  }
  0x28   :  { %s3022_s8 = smov 96   ;;  %s3023_s27 = smov 64   ;;  %vm288_vm2 = vcmask 1043456   ;;  %vm873_vm3 = vcmask 261120   ;;  %vm1115_vm4 = vcmask 523264  }
  0x29   :  { %s3024_s4 = smov 88   ;;  %s3025_s28 = smov 120  }
  0x2a   :  { %2556 = vmatpush3.bf16.msra.mxu0 %v2912_v7  ;;  %s3026_s9 = smov 80   ;;  %s3027_s5 = smov 112  }
  0x2b   :  { %2557 = vmatprep.subr.bf16.mxu0 %v3020_v1  ;;  %s3903_s2 = sld [smem:[#allocation13_spill]]  ;;  %s3028_s30 = smov 56  }
  0x2c   :  { %s3886_s7 = smov 72   ;;  %s3888_s6 = smov 104  }
  0x2d   :  { %v3204_v9 = vld [vmem:[%s3901_s3] sm:$0xff]  ;;  %s3030_s3 = smov 48   ;;  %s3032_s26 = smov 40  }
  0x2e   :  { %v3209_v10 = vpack.c.bf16 %v3204_v9, %v3204_v9  ;;  %2558 = vmatpush3.bf16.msra.mxu0 %v2913_v8  ;;  %v2320_v11 = vld [vmem:[%s3902_s1] ss:$0 sm:$0xff]  ;;  %s3905_s1 = sld [smem:[#allocation17_spill]]  ;;  %s3907_s0 = sld [smem:[#allocation16_spill]] }
  0x2f   :  { %2599 = vmatprep.subr.bf16.mxu0 %v3020_v1  ;;  %s3911_s29 = smov 72  }
  0x31   :  { %2560 = vmatmul.mubr.bf16.vlgmr.msra.gmra.mrb[0].mxu0 %v3209_v10  ;;  %v333_v35 = vld [vmem:[%s3903_s2] sm:$0xf] }
  0x32   :  { %2601 = vmatprep.mubr.msk.bf16.mxu0 %vm3021_vm0, %v3020_v1  ;;  %v338_v39 = vsel %vm288_vm2, %v333_v35, 0 }
 0x104   :  { %v213_v12 = vpop.f32.mrb[0].mxu0 }
 0x105   :  { %v214_v13 = vadd.f32 %v2320_v11, %v213_v12  ;;  %v2561_v14 = vpop.f32.mrb[1].mxu0 }
 0x106   :  { %v216_v15 = vpop.f32.mrb[2].mxu0 }
 0x107   :  { %v3218_v16 = vpack.c.bf16 %v214_v13, %v214_v13  ;;  %v2562_v17 = vpop.f32.mrb[3].mxu0 }
 0x108   :  { %v2335_v17 = vld [vmem:[%s3903_s2 + $0x4] sm:$0xf] }
 0x109   :  { %222 = vrot.lane.b32.xlu0 %v3218_v16, %s3022_s8 }
 0x17b   :  { %v223_v18 = vpop.permute.xlu0 %222 }
 0x17c   :  { %v229_v19 = vsel %vm224_vm1, %v223_v18, 0 }
 0x17d   :  { %2564 = vmatpush3.bf16.xpose.msra.mxu1 %v229_v19 }
 0x17e   :  { %2569 = vmatprep.subr.bf16.mxu1 %v3020_v1 }
 0x184   :  { %2566 = vmatmul.mubr.msk.bf16.vlgmr.msra.gmra.mrb[0].mxu1 %vm224_vm1, %v3218_v16 }
 0x185   :  { %2571 = vmatprep.mubr.msk.bf16.mxu1 %vm3021_vm0, %v3020_v1 }
 0x257   :  { %v265_v20 = vpop.f32.mrb[0].mxu1 }
 0x258   :  { %v2567_v21 = vpop.f32.mrb[1].mxu1  ;;  %v271_v22 = vsel %vm224_vm1, %v265_v20, -inf }
 0x259   :  { %272 = vmax.xlane.f32.xlu0 %v271_v22  ;;  %v268_v23 = vpop.f32.mrb[2].mxu1 }
 0x25a   :  { %v2568_v24 = vpop.f32.mrb[3].mxu1 }
 0x2e6   :  { %v273_v25 = vpop.xlane.xlu0 %272 }
 0x2e7   :  { %v274_v26 = vsub.f32 %v265_v20, %v273_v25  ;;  %v505_v20 = vsel %vm288_vm2, %v2335_v17, 0 }
 0x2e9   :  { %v275_v27 = vmul.f32 1.442695, %v274_v26 }
 0x2eb   :  { %2934 = vpow2.f32 %v275_v27 }
 0x2f5   :  { %v2935_v28 = vpop.eup %2934 }
 0x2f6   :  { %v277_v29 = vsel %vm224_vm1, %v2935_v28, 0.0 }
 0x2f7   :  { %278 = vadd.xlane.f32.xlu1 %v277_v29 }
 0x308   :  { %283 = vrot.lane.b32.xlu1 %v3218_v16, %s3023_s27  ;;  %s3909_s27 = sld [smem:[#allocation10_spill]] }
 0x30c   :  { %389 = vrot.lane.b32.xlu1 %v3218_v16, %s3024_s4 }
 0x310   :  { %387 = vrot.lane.b32.xlu1 %v3218_v16, %s3025_s28 }
 0x314   :  { %550 = vrot.lane.b32.xlu1 %v3218_v16, %s3026_s9 }
 0x318   :  { %548 = vrot.lane.b32.xlu1 %v3218_v16, %s3027_s5 }
 0x384   :  { %v279_v30 = vpop.xlane.xlu1 %278 }
 0x385   :  { %2936 = vrcp.f32 %v279_v30 }
 0x388   :  { %v284_v31 = vpop.permute.xlu1 %283 }
 0x389   :  { %v290_v32 = vsel %vm288_vm2, %v284_v31, 0 }
 0x38a   :  { %2570 = vmatpush3.bf16.msra.mxu1 %v290_v32 }
 0x38b   :  { %2575 = vmatprep.subr.bf16.mxu1 %v3020_v1 }
 0x38c   :  { %v390_v33 = vpop.permute.xlu1 %389 }
 0x38d   :  { %v395_v47 = vsel %vm224_vm1, %v390_v33, 0 }
 0x38f   :  { %v2937_v34 = vpop.eup %2936 }
 0x390   :  { %v3244_v36 = vmul.f32 %v2937_v34, %v2935_v28  ;;  %v388_v37 = vpop.permute.xlu1 %387 }
 0x392   :  { %v282_v38 = vpack.c.bf16 %v3244_v36, %v3244_v36 }
 0x394   :  { %2572 = vmatmul.mubr.msk.bf16.vlgmr.msra.gmra.mrb[4].mxu1 %vm224_vm1, %v282_v38  ;;  %v551_v40 = vpop.permute.xlu1 %550 }
 0x395   :  { %v556_v41 = vsel %vm224_vm1, %v551_v40, 0  ;;  %2576 = vmatpush3.bf16.msra.mxu1 %v338_v39  ;;  %2577 = vmatprep.mubr.msk.bf16.mxu1 %vm3021_vm0, %v3020_v1 }
 0x396   :  { %2600 = vmatpush3.bf16.xpose.msra.mxu0 %v556_v41  ;;  %2581 = vmatprep.subr.bf16.mxu1 %v3020_v1 }
 0x397   :  { %2611 = vmatprep.subr.bf16.mxu0 %v3020_v1 }
 0x398   :  { %v549_v42 = vpop.permute.xlu1 %548 }
 0x39d   :  { %2602 = vmatmul.mubr.msk.bf16.vlgmr.msra.gmra.mrb[4].mxu0 %vm224_vm1, %v549_v42 }
 0x39e   :  { %2613 = vmatprep.mubr.msk.bf16.mxu0 %vm3021_vm0, %v3020_v1 }
 0x467   :  { %v326_v43 = vpop.f32.mrb[4].mxu1 }
 0x468   :  { %v332_v44 = vpack.c.bf16 %v326_v43, %v326_v43  ;;  %v2573_v45 = vpop.f32.mrb[5].mxu1 }
 0x469   :  { %v329_v46 = vpop.f32.mrb[6].mxu1 }
 0x46a   :  { %v2574_v48 = vpop.f32.mrb[7].mxu1  ;;  %2578 = vmatmul.mubr.msk.bf16.vlgmr.msra.gmra.mrb[8].mxu1 %vm224_vm1, %v332_v44 }
 0x46b   :  { %2582 = vmatpush3.bf16.xpose.msra.mxu1 %v395_v47  ;;  %2583 = vmatprep.mubr.msk.bf16.mxu1 %vm3021_vm0, %v3020_v1 }
 0x46c   :  { %2587 = vmatprep.subr.bf16.mxu1 %v3020_v1 }
 0x470   :  { %v592_v49 = vpop.f32.mrb[4].mxu0 }
 0x471   :  { %v2603_v50 = vpop.f32.mrb[5].mxu0  ;;  %v598_v62 = vsel %vm224_vm1, %v592_v49, -inf }
 0x472   :  { %2584 = vmatmul.mubr.msk.bf16.vlgmr.msra.gmra.mrb[12].mxu1 %vm224_vm1, %v388_v37  ;;  %v595_v51 = vpop.f32.mrb[6].mxu0  ;;  %v2339_v37 = vld [vmem:[%s3903_s2 + $0x8] sm:$0xf] }
 0x473   :  { %v2604_v52 = vpop.f32.mrb[7].mxu0  ;;  %2589 = vmatprep.mubr.msk.bf16.mxu1 %vm3021_vm0, %v3020_v1  ;;  %v666_v38 = vsel %vm288_vm2, %v2339_v37, 0  ;;  %v2920_v37 = vld [vmem:[%s3905_s1] sm:$0xff]  }
 0x474   :  { %2612 = vmatpush3.bf16.msra.mxu0 %v666_v38  ;;  %v2921_v38 = vld [vmem:[%s3866_s10 + $0x30] sm:$0xff]  }
 0x475   :  { %2623 = vmatprep.subr.bf16.mxu0 %v3020_v1 }
 0x53d   :  { %v3266_v53 = vpop.f32.mrb[8].mxu1 }
 0x53e   :  { %v2579_v54 = vpop.f32.mrb[9].mxu1 }
 0x53f   :  { %v377_v55 = vpop.f32.mrb[10].mxu1 }
 0x540   :  { %v2580_v56 = vpop.f32.mrb[11].mxu1 }
 0x545   :  { %v431_v57 = vpop.f32.mrb[12].mxu1 }
 0x546   :  { %v2585_v58 = vpop.f32.mrb[13].mxu1  ;;  %v437_v59 = vsel %vm224_vm1, %v431_v57, -inf }
 0x547   :  { %438 = vmax.xlane.f32.xlu0 %v437_v59  ;;  %v434_v60 = vpop.f32.mrb[14].mxu1 }
 0x548   :  { %v2586_v61 = vpop.f32.mrb[15].mxu1 }
 0x55d   :  { %450 = vrot.lane.b32.xlu0 %v3218_v16, %s3028_s30 }
 0x57c   :  { %599 = vmax.xlane.f32.xlu0 %v598_v62 }
 0x592   :  { %711 = vrot.lane.b32.xlu0 %v3218_v16, %s3886_s7 }
 0x5d4   :  { %v439_v63 = vpop.xlane.xlu0 %438 }
 0x5d5   :  { %v440_v0 = vsub.f32 %v431_v57, %v439_v63  ;;  %v2343_v63 = vld [vmem:[%s3903_s2 + $0xc] sm:$0xf] }
 0x5d7   :  { %v441_v2 = vmul.f32 1.442695, %v440_v0 }
 0x5d8   :  { %v451_v3 = vpop.permute.xlu0 %450 }
 0x5d9   :  { %2938 = vpow2.f32 %v441_v2  ;;  %v456_v4 = vsel %vm288_vm2, %v451_v3, 0 }
 0x5da   :  { %2588 = vmatpush3.bf16.msra.mxu1 %v456_v4 }
 0x5db   :  { %2593 = vmatprep.subr.bf16.mxu1 %v3020_v1 }
 0x5e3   :  { %v2939_v5 = vpop.eup %2938 }
 0x5e4   :  { %v443_v6 = vsel %vm224_vm1, %v2939_v5, 0.0 }
 0x5e5   :  { %444 = vadd.xlane.f32.xlu1 %v443_v6 }
 0x609   :  { %v600_v7 = vpop.xlane.xlu0 %599 }
 0x60a   :  { %v601_v8 = vsub.f32 %v592_v49, %v600_v7 }
 0x60c   :  { %v602_v11 = vmul.f32 1.442695, %v601_v8 }
 0x60d   :  { %v712_v33 = vpop.permute.xlu0 %711 }
 0x60e   :  { %2940 = vpow2.f32 %v602_v11  ;;  %v717_v35 = vsel %vm224_vm1, %v712_v33, 0  ;;  %v2916_v33 = vld [vmem:[%s3866_s10 + $0x10] sm:$0xff]  }
 0x618   :  { %v2941_v12 = vpop.eup %2940 }
 0x619   :  { %v604_v13 = vsel %vm224_vm1, %v2941_v12, 0.0 }
 0x61a   :  { %605 = vadd.xlane.f32.xlu1 %v604_v13 }
 0x62b   :  { %611 = vrot.lane.b32.xlu1 %v3218_v16, %s3030_s3  ;;  %s3904_s3 = sld [smem:[#allocation14_spill]] }
 0x62f   :  { %709 = vrot.lane.b32.xlu1 %v3218_v16, %s3888_s6 }
 0x631   :  { %v2332_v39 = vld [vmem:[%s3904_s3] ss:$0 sm:$0xff]  ;;  %s3908_s3 = sld [smem:[#allocation9_spill]] }
 0x632   :  { %v386_v40 = vadd.f32 %v2332_v39, %v3266_v53  ;;  %v2922_v39 = vld [vmem:[%s3905_s1 + $0x8] sm:$0xff]   ;;  %s3906_s1 = sld [smem:[#allocation15_spill]] }
 0x672   :  { %v445_v14 = vpop.xlane.xlu1 %444 }
 0x673   :  { %2942 = vrcp.f32 %v445_v14 }
 0x67d   :  { %v2943_v15 = vpop.eup %2942 }
 0x67e   :  { %v447_v18 = vmul.f32 %v2943_v15, %v2939_v5 }
 0x680   :  { %v449_v19 = vpack.c.bf16 %v447_v18, %v447_v18  ;;  %v448_v24 = vadd.f32 %v447_v18, %v3244_v36 }
 0x682   :  { %2590 = vmatmul.mubr.msk.bf16.vlgmr.msra.gmra.mrb[16].mxu1 %vm224_vm1, %v449_v19 }
 0x683   :  { %2594 = vmatpush3.bf16.msra.mxu1 %v505_v20  ;;  %2595 = vmatprep.mubr.msk.bf16.mxu1 %vm3021_vm0, %v3020_v1 }
 0x684   :  { %2605 = vmatprep.subr.bf16.mxu1 %v3020_v1 }
 0x6a7   :  { %v606_v21 = vpop.xlane.xlu1 %605 }
 0x6a8   :  { %2944 = vrcp.f32 %v606_v21 }
 0x6ab   :  { %v612_v26 = vpop.permute.xlu1 %611 }
 0x6ac   :  { %v617_v31 = vsel %vm288_vm2, %v612_v26, 0 }
 0x6af   :  { %v710_v36 = vpop.permute.xlu1 %709 }
 0x6b2   :  { %v2945_v22 = vpop.eup %2944 }
 0x6b3   :  { %v608_v23 = vmul.f32 %v2945_v22, %v2941_v12 }
 0x6b5   :  { %v3289_v25 = vadd.f32 %v608_v23, %v448_v24  ;;  %v610_v34 = vpack.c.bf16 %v608_v23, %v608_v23 }
 0x755   :  { %v492_v27 = vpop.f32.mrb[16].mxu1 }
 0x756   :  { %v498_v28 = vpack.c.bf16 %v492_v27, %v492_v27  ;;  %v2591_v29 = vpop.f32.mrb[17].mxu1  ;;  %v2914_v27 = vld [vmem:[%s3866_s10] sm:$0xff]  }
 0x757   :  { %v495_v30 = vpop.f32.mrb[18].mxu1 }
 0x758   :  { %v2592_v32 = vpop.f32.mrb[19].mxu1  ;;  %2596 = vmatmul.mubr.msk.bf16.vlgmr.msra.gmra.mrb[20].mxu1 %vm224_vm1, %v498_v28  ;;  %v2915_v28 = vld [vmem:[%s3866_s10 + $0x8] sm:$0xff]  }
 0x759   :  { %2606 = vmatpush3.bf16.msra.mxu1 %v617_v31  ;;  %2607 = vmatprep.mubr.msk.bf16.mxu1 %vm3021_vm0, %v3020_v1 }
 0x75a   :  { %2617 = vmatprep.subr.bf16.mxu1 %v3020_v1 }
 0x760   :  { %2608 = vmatmul.mubr.msk.bf16.vlgmr.msra.gmra.mrb[24].mxu1 %vm224_vm1, %v610_v34  ;;  %v2917_v34 = vld [vmem:[%s3866_s10 + $0x18] sm:$0xff]  }
 0x761   :  { %2619 = vmatprep.mubr.msk.bf16.mxu1 %vm3021_vm0, %v3020_v1 }
 0x762   :  { %2618 = vmatpush3.bf16.xpose.msra.mxu1 %v717_v35  ;;  %v2918_v35 = vld [vmem:[%s3866_s10 + $0x20] sm:$0xff]  }
 0x763   :  { %2629 = vmatprep.subr.bf16.mxu1 %v3020_v1 }
 0x769   :  { %2620 = vmatmul.mubr.msk.bf16.vlgmr.msra.gmra.mrb[28].mxu1 %vm224_vm1, %v710_v36  ;;  %v2919_v36 = vld [vmem:[%s3866_s10 + $0x28] sm:$0xff]  }
 0x76a   :  { %2631 = vmatprep.mubr.msk.bf16.mxu1 %vm3021_vm0, %v3020_v1 }
 0x82b   :  { %v541_v41 = vpop.f32.mrb[20].mxu1 }
 0x82c   :  { %v547_v42 = vadd.f32 %v541_v41, %v386_v40  ;;  %v2597_v43 = vpop.f32.mrb[21].mxu1  ;;  %v2923_v40 = vld [vmem:[%s3866_s10 + $0x38] sm:$0xff]   ;;  %v2924_v41 = vld [vmem:[%s3868_s12] sm:$0xff]  }
 0x82d   :  { %v544_v44 = vpop.f32.mrb[22].mxu1 }
 0x82e   :  { %v2598_v45 = vpop.f32.mrb[23].mxu1 }
 0x833   :  { %v653_v46 = vpop.f32.mrb[24].mxu1 }
 0x834   :  { %v659_v47 = vpack.c.bf16 %v653_v46, %v653_v46  ;;  %v2609_v48 = vpop.f32.mrb[25].mxu1  ;;  %v2345_v46 = vld [vmem:[%s3906_s1] ss:$0 sm:$0xff] }
 0x835   :  { %v656_v49 = vpop.f32.mrb[26].mxu1  ;;  %v2346_v48 = vld [vmem:[%s3907_s0] ss:$0 sm:$0xff] }
 0x836   :  { %v2610_v50 = vpop.f32.mrb[27].mxu1  ;;  %2614 = vmatmul.mubr.msk.bf16.vlgmr.msra.gmra.mrb[8].mxu0 %vm224_vm1, %v659_v47 }
 0x837   :  { %2625 = vmatprep.mubr.msk.bf16.mxu0 %vm3021_vm0, %v3020_v1  ;;  %v85_v50 = vld [vmem:[%s3908_s3 + $0x8] sm:$0xff] }
 0x83c   :  { %v753_v51 = vpop.f32.mrb[28].mxu1 }
 0x83d   :  { %v2621_v52 = vpop.f32.mrb[29].mxu1  ;;  %v759_v54 = vsel %vm224_vm1, %v753_v51, -inf }
 0x83e   :  { %760 = vmax.xlane.f32.xlu1 %v759_v54  ;;  %v756_v53 = vpop.f32.mrb[30].mxu1 }
 0x83f   :  { %v2622_v55 = vpop.f32.mrb[31].mxu1  ;;  %v2925_v53 = vld [vmem:[%s3868_s12 + $0x8] sm:$0xff]  }
 0x840   :  { %v2926_v55 = vld [vmem:[%s3868_s12 + $0x10] sm:$0xff]  }
 0x84f   :  { %772 = vrot.lane.b32.xlu1 %v3218_v16, %s3032_s26  ;;  %v827_v16 = vsel %vm288_vm2, %v2343_v63, 0  ;;  %v90_v63 = vld [vmem:[%s3908_s3 + $0x30] sm:$0xff] }
 0x850   :  { %2630 = vmatpush3.bf16.msra.mxu1 %v827_v16  ;;  %v91_v16 = vld [vmem:[%s3908_s3 + $0x38] sm:$0xff] }
 0x851   :  { %2655 = vmatprep.subr.bf16.mxu1 %v3020_v1 }
 0x8cb   :  { %v761_v56 = vpop.xlane.xlu1 %760 }
 0x8cc   :  { %v762_v57 = vsub.f32 %v753_v51, %v761_v56  ;;  %v2927_v56 = vld [vmem:[%s3868_s12 + $0x18] sm:$0xff]  }
 0x8ce   :  { %v763_v58 = vmul.f32 1.442695, %v762_v57  ;;  %v86_v57 = vld [vmem:[%s3908_s3 + $0x10] sm:$0xff] }
 0x8cf   :  { %v773_v59 = vpop.permute.xlu1 %772 }
 0x8d0   :  { %2946 = vpow2.f32 %v763_v58  ;;  %v778_v60 = vsel %vm288_vm2, %v773_v59, 0  ;;  %v87_v58 = vld [vmem:[%s3908_s3 + $0x18] sm:$0xff]  ;;  %v88_v59 = vld [vmem:[%s3908_s3 + $0x20] sm:$0xff] }
 0x8d1   :  { %2624 = vmatpush3.bf16.msra.mxu0 %v778_v60  ;;  %v89_v60 = vld [vmem:[%s3908_s3 + $0x28] sm:$0xff] }
 0x8d2   :  { %2635 = vmatprep.subr.bf16.mxu0 %v3020_v1 }
 0x8da   :  { %v2947_v61 = vpop.eup %2946 }
 0x8db   :  { %v765_v62 = vsel %vm224_vm1, %v2947_v61, 0.0 }
 0x8dc   :  { %766 = vadd.xlane.f32.xlu0 %v765_v62  ;;  %v102_v62 = vpack.c.bf16 %v89_v60, %v88_v59 }
 0x909   :  { %v702_v0 = vpop.f32.mrb[8].mxu0 }
 0x90a   :  { %v708_v2 = vadd.f32 %v702_v0, %v547_v42  ;;  %v2615_v3 = vpop.f32.mrb[9].mxu0  ;;  %v92_v0 = vld [vmem:[%s3908_s3 + $0x40] sm:$0xff] }
 0x90b   :  { %v705_v4 = vpop.f32.mrb[10].mxu0  ;;  %v103_v3 = vpack.c.bf16 %v91_v16, %v90_v63 }
 0x90c   :  { %v2616_v5 = vpop.f32.mrb[11].mxu0 }
 0x90d   :  { %v94_v5 = vld [vmem:[%s3908_s3 + $0x50] sm:$0xff] }
 0x969   :  { %v767_v6 = vpop.xlane.xlu0 %766 }
 0x96a   :  { %2948 = vrcp.f32 %v767_v6  ;;  %v95_v6 = vld [vmem:[%s3908_s3 + $0x58] sm:$0xff] }
 0x974   :  { %v2949_v7 = vpop.eup %2948 }
 0x975   :  { %v769_v8 = vmul.f32 %v2949_v7, %v2947_v61  ;;  %v101_v61 = vpack.c.bf16 %v87_v58, %v86_v57  ;;  %v96_v7 = vld [vmem:[%s3908_s3 + $0x60] sm:$0xff] }
 0x977   :  { %v771_v11 = vpack.c.bf16 %v769_v8, %v769_v8  ;;  %v770_v12 = vadd.f32 %v769_v8, %v3289_v25  ;;  %v97_v8 = vld [vmem:[%s3908_s3 + $0x68] sm:$0xff] }
 0x979   :  { %2626 = vmatmul.mubr.msk.bf16.vlgmr.msra.gmra.mrb[12].mxu0 %vm224_vm1, %v771_v11  ;;  %v870_v13 = vmul.f32 0.25, %v770_v12  ;;  %v105_v11 = vpack.c.bf16 %v95_v6, %v94_v5  ;;  %v106_v12 = vpack.c.bf16 %v97_v8, %v96_v7 }
 0x97a   :  { %2651 = vmatprep.mubr.msk.bf16.mxu0 %vm3021_vm0, %v3020_v1  ;;  %2636 = vmatpush3.bf16.msra.mxu0 %v2914_v27  ;;  %v2359_v27 = vld [vmem:[%s3869_s13] ss:$0 sm:$0xff] }
 0x97b   :  { %871 = vst.msk [vmem:[#allocation4] sm:$0xff] %vm224_vm1, %v870_v13  ;;  %2637 = vmatprep.subr.bf16.mxu0 %v3020_v1  ;;  %v98_v13 = vld [vmem:[%s3908_s3 + $0x70] sm:$0xff] }
 0x97e   :  { %2638 = vmatpush3.bf16.msra.mxu0 %v2915_v28 }
 0x97f   :  { %2639 = vmatprep.subr.bf16.mxu0 %v3020_v1 }
 0x982   :  { %2640 = vmatpush3.bf16.msra.mxu0 %v2916_v33 }
 0x983   :  { %2641 = vmatprep.subr.bf16.mxu0 %v3020_v1 }
 0x986   :  { %2642 = vmatpush3.bf16.msra.mxu0 %v2917_v34 }
 0x987   :  { %2643 = vmatprep.subr.bf16.mxu0 %v3020_v1 }
 0x98a   :  { %2644 = vmatpush3.bf16.msra.mxu0 %v2918_v35 }
 0x98b   :  { %2645 = vmatprep.subr.bf16.mxu0 %v3020_v1 }
 0x98e   :  { %2646 = vmatpush3.bf16.msra.mxu0 %v2919_v36 }
 0x98f   :  { %2647 = vmatprep.subr.bf16.mxu0 %v3020_v1 }
 0x992   :  { %2648 = vmatpush3.bf16.msra.mxu0 %v2921_v38 }
 0x993   :  { %2649 = vmatprep.subr.bf16.mxu0 %v3020_v1 }
 0x996   :  { %2650 = vmatpush3.bf16.msra.mxu0 %v2923_v40 }
 0x997   :  { %2707 = vmatprep.subr.bf16.mxu0 %v3020_v1 }
 0x999   :  { %2652 = vmatmul.mubr.bf16.vlgmr.msra.gmra.mrb[16].mxu0 %v3209_v10  ;;  %v84_v10 = vld [vmem:[%s3908_s3] sm:$0xff] }
 0x99a   :  { %2723 = vmatprep.mubr.msk.bf16.mxu0 %vm3021_vm0, %v3020_v1  ;;  %v100_v52 = vpack.c.bf16 %v85_v50, %v84_v10 }
 0xa4c   :  { %v814_v14 = vpop.f32.mrb[12].mxu0 }
 0xa4d   :  { %v820_v15 = vpack.c.bf16 %v814_v14, %v814_v14  ;;  %v2627_v17 = vpop.f32.mrb[13].mxu0  ;;  %v99_v14 = vld [vmem:[%s3908_s3 + $0x78] sm:$0xff] }
 0xa4e   :  { %v817_v18 = vpop.f32.mrb[14].mxu0 }
 0xa4f   :  { %v2628_v19 = vpop.f32.mrb[15].mxu0  ;;  %2632 = vmatmul.mubr.msk.bf16.vlgmr.msra.gmra.mrb[32].mxu1 %vm224_vm1, %v820_v15  ;;  %v107_v15 = vpack.c.bf16 %v99_v14, %v98_v13 }
 0xa50   :  { %2659 = vmatprep.mubr.msk.bf16.mxu1 %vm3021_vm0, %v3020_v1  ;;  %2656 = vmatpush3.bf16.msra.mxu1 %v2920_v37 }
 0xa51   :  { %2657 = vmatprep.subr.bf16.mxu1 %v3020_v1 }
 0xa54   :  { %2658 = vmatpush3.bf16.msra.mxu1 %v2922_v39 }
 0xa55   :  { %2663 = vmatprep.subr.bf16.mxu1 %v2924_v41 }
 0xa6c   :  { %v1007_v17 = vpop.f32.mrb[16].mxu0 }
 0xa6d   :  { %v2653_v18 = vpop.f32.mrb[17].mxu0 }
 0xa6e   :  { %v1010_v19 = vpop.f32.mrb[18].mxu0 }
 0xb22   :  { %v863_v20 = vpop.f32.mrb[32].mxu1 }
 0xb23   :  { %v869_v21 = vadd.f32 %v863_v20, %v708_v2  ;;  %v2633_v22 = vpop.f32.mrb[33].mxu1  ;;  %v93_v2 = vld [vmem:[%s3908_s3 + $0x48] sm:$0xff]  ;;  %v2654_v20 = vpop.f32.mrb[19].mxu0 }
 0xb24   :  { %v866_v23 = vpop.f32.mrb[34].mxu1  ;;  %v104_v4 = vpack.c.bf16 %v93_v2, %v92_v0 }
 0xb25   :  { %v2634_v24 = vpop.f32.mrb[35].mxu1  ;;  %v872_v25 = vadd.f32 %v869_v21, %v3204_v9 }
 0xb27   :  { %v874_v26 = vsel %vm873_vm3, %v872_v25, 0.0 }
 0xb28   :  { %875 = vadd.xlane.f32.xlu0 %v874_v26 }
 0xbb5   :  { %v876_v29 = vpop.xlane.xlu0 %875 }
 0xbb6   :  { %v878_v30 = vmul.f32 0.03125, %v876_v29 }
 0xbb8   :  { %v879_v9 = vsub.f32 %v872_v25, %v878_v30 }
 0xbba   :  { %v880_v31 = vmul.f32 %v879_v9, %v879_v9 }
 0xbbc   :  { %v881_v32 = vsel %vm873_vm3, %v880_v31, 0.0 }
 0xbbd   :  { %882 = vadd.xlane.f32.xlu0 %v881_v32 }
 0xc4a   :  { %v883_v42 = vpop.xlane.xlu0 %882 }
 0xc4b   :  { %v884_v43 = vmul.f32 0.03125, %v883_v42 }
 0xc4d   :  { %v885_v44 = vadd.f32 1e-05, %v884_v43 }
 0xc4f   :  { %2950 = vrsqrt.f32 %v885_v44 }
 0xc59   :  { %v2951_v45 = vpop.eup %2950 }
 0xc5a   :  { %v887_v47 = vmul.f32 %v2951_v45, %v879_v9 }
 0xc5c   :  { %v895_v49 = vmul.f32 %v2345_v46, %v887_v47 }
 0xc5e   :  { %v3394_v51 = vadd.f32 %v2346_v48, %v895_v49 }
 0xc60   :  { %v904_v54 = vpack.c.bf16 %v3394_v51, %v3394_v51 }
 0xc62   :  { %2660 = vmatmul.mubr.msk.bf16.vlgmr.msra.gmra.mrb[36].mxu1 %vm873_vm3, %v904_v54 }
 0xc63   :  { %2664 = vmatpush3.bf16.msra.mxu1 %v2924_v41  ;;  %2671 = vmatprep.mubr.msk.bf16.mxu1 %vm1115_vm4, %v100_v52 }
 0xc64   :  { %2665 = vmatprep.subr.bf16.mxu1 %v2925_v53 }
 0xc67   :  { %2666 = vmatpush3.bf16.msra.mxu1 %v2925_v53 }
 0xc68   :  { %2667 = vmatprep.subr.bf16.mxu1 %v2926_v55 }
 0xc6b   :  { %2668 = vmatpush3.bf16.msra.mxu1 %v2926_v55 }
 0xc6c   :  { %2669 = vmatprep.subr.bf16.mxu1 %v2927_v56 }
 0xc6f   :  { %2670 = vmatpush3.bf16.msra.mxu1 %v2927_v56 }
 0xc70   :  { %2687 = vmatprep.subr.bf16.mxu1 %v3020_v1 }
 0xc72   :  { %2672 = vmatmul.mubr.msk.bf16.vlgmr.msra.gmra.mrb[40].mxu1 %vm1115_vm4, %v101_v61 }
 0xc73   :  { %2675 = vmatprep.mubr.msk.bf16.mxu1 %vm1115_vm4, %v102_v62 }
 0xc7a   :  { %2676 = vmatmul.mubr.msk.bf16.gmra.mrb[44].mxu1 %vm1115_vm4, %v103_v3 }
 0xc7b   :  { %2679 = vmatprep.mubr.msk.bf16.mxu1 %vm1115_vm4, %v104_v4 }
 0xc82   :  { %2680 = vmatmul.mubr.msk.bf16.gmra.mrb[48].mxu1 %vm1115_vm4, %v105_v11  ;;  %v2358_v11 = vld [vmem:[%s3867_s11] ss:$0 sm:$0xff] }
 0xc83   :  { %2683 = vmatprep.mubr.msk.bf16.mxu1 %vm1115_vm4, %v106_v12 }
 0xc8a   :  { %2684 = vmatmul.mubr.msk.bf16.gmra.mrb[52].mxu1 %vm1115_vm4, %v107_v15 }
 0xc8b   :  { %2703 = vmatprep.mubr.msk.bf16.mxu1 %vm3021_vm0, %v3020_v1 }
 0xd35   :  { %v1062_v21 = vpop.f32.mrb[36].mxu1 }
 0xd36   :  { %v3461_v22 = vadd.f32 %v1062_v21, %v1007_v17  ;;  %v2661_v23 = vpop.f32.mrb[37].mxu1  ;;  %v3522_v17 = vld [vmem:[%s3909_s27] sm:$0xff] }
 0xd37   :  { %v1065_v24 = vpop.f32.mrb[38].mxu1 }
 0xd38   :  { %v2662_v25 = vpop.f32.mrb[39].mxu1  ;;  %v1075_v13 = vadd.f32 %v2358_v11, %v3461_v22 }
 0xd3a   :  { %v3512_v14 = vpack.c.bf16 %v1075_v13, %v1075_v13 }
 0xd45   :  { %v2673_v26 = vpop.f32.mrb[40].mxu1 }
 0xd46   :  { %v1174_v28 = vpop.f32.mrb[41].mxu1  ;;  %v1183_v30 = vadd.f32 %v2673_v26, %v2359_v27 }
 0xd47   :  { %v2674_v29 = vpop.f32.mrb[42].mxu1  ;;  %v1175_v32 = vadd.f32 %v2359_v27, %v1174_v28 }
 0xd48   :  { %v1186_v9 = vadd.f32 %v2674_v29, %v2359_v27  ;;  %v1177_v31 = vpop.f32.mrb[43].mxu1 }
 0xd49   :  { %v1178_v33 = vadd.f32 %v2359_v27, %v1177_v31 }
 0xd4a   :  { %v3466_v34 = vpack.c.bf16 %v1186_v9, %v1183_v30 }
 0xd4b   :  { %v3468_v35 = vpack.c.bf16 %v1178_v33, %v1175_v32 }
 0xd4c   :  { %v1255_v47 = vsel %vm224_vm1, %v3466_v34, 0 }
 0xd4d   :  { %1333 = vrot.lane.b32.xlu0 %v3468_v35, %s3022_s8  ;;  %v1252_v36 = vsel %vm224_vm1, %v3468_v35, 0  ;;  %v2677_v37 = vpop.f32.mrb[44].mxu1 }
 0xd4e   :  { %2688 = vmatpush3.bf16.xpose.msra.mxu1 %v1252_v36  ;;  %v1199_v38 = vadd.f32 %v2677_v37, %v2359_v27  ;;  %v1190_v39 = vpop.f32.mrb[45].mxu1 }
 0xd4f   :  { %v1191_v40 = vadd.f32 %v2359_v27, %v1190_v39  ;;  %v2678_v41 = vpop.f32.mrb[46].mxu1  ;;  %2689 = vmatprep.subr.bf16.mxu1 %v3020_v1 }
 0xd50   :  { %v1202_v42 = vadd.f32 %v2678_v41, %v2359_v27  ;;  %v1193_v43 = vpop.f32.mrb[47].mxu1 }
 0xd51   :  { %v1194_v44 = vadd.f32 %v2359_v27, %v1193_v43 }
 0xd52   :  { %v3475_v45 = vpack.c.bf16 %v1202_v42, %v1199_v38 }
 0xd53   :  { %v3477_v46 = vpack.c.bf16 %v1194_v44, %v1191_v40  ;;  %v1398_v44 = vld [vmem:[%s3870_s14] sm:$0xf] }
 0xd54   :  { %v1261_v5 = vsel %vm224_vm1, %v3475_v45, 0 }
 0xd55   :  { %v2681_v48 = vpop.f32.mrb[48].mxu1  ;;  %v1258_v58 = vsel %vm224_vm1, %v3477_v46, 0 }
 0xd56   :  { %2690 = vmatpush3.bf16.xpose.msra.mxu1 %v1255_v47  ;;  %v1215_v49 = vadd.f32 %v2681_v48, %v2359_v27  ;;  %v1206_v10 = vpop.f32.mrb[49].mxu1  ;;  %v1403_v48 = vsel %vm288_vm2, %v1398_v44, 0 }
 0xd57   :  { %2691 = vmatprep.subr.bf16.mxu1 %v3020_v1  ;;  %v1207_v50 = vadd.f32 %v2359_v27, %v1206_v10  ;;  %v2682_v52 = vpop.f32.mrb[50].mxu1 }
 0xd58   :  { %v1218_v54 = vadd.f32 %v2682_v52, %v2359_v27  ;;  %v1209_v53 = vpop.f32.mrb[51].mxu1 }
 0xd59   :  { %v1210_v55 = vadd.f32 %v2359_v27, %v1209_v53 }
 0xd5a   :  { %v3482_v56 = vpack.c.bf16 %v1218_v54, %v1215_v49 }
 0xd5b   :  { %v3484_v57 = vpack.c.bf16 %v1210_v55, %v1207_v50 }
 0xd5c   :  { %v1267_v7 = vsel %vm224_vm1, %v3482_v56, 0 }
 0xd5d   :  { %v2685_v59 = vpop.f32.mrb[52].mxu1  ;;  %v1264_v6 = vsel %vm224_vm1, %v3484_v57, 0 }
 0xd5e   :  { %2692 = vmatpush3.bf16.xpose.msra.mxu1 %v1258_v58  ;;  %v1231_v60 = vadd.f32 %v2685_v59, %v2359_v27  ;;  %v1222_v61 = vpop.f32.mrb[53].mxu1 }
 0xd5f   :  { %2693 = vmatprep.subr.bf16.mxu1 %v3020_v1  ;;  %v1223_v62 = vadd.f32 %v2359_v27, %v1222_v61  ;;  %v2686_v63 = vpop.f32.mrb[54].mxu1 }
 0xd60   :  { %v1234_v16 = vadd.f32 %v2686_v63, %v2359_v27  ;;  %v1225_v0 = vpop.f32.mrb[55].mxu1 }
 0xd61   :  { %v1226_v2 = vadd.f32 %v2359_v27, %v1225_v0 }
 0xd62   :  { %v3489_v3 = vpack.c.bf16 %v1234_v16, %v1231_v60 }
 0xd63   :  { %v3491_v4 = vpack.c.bf16 %v1226_v2, %v1223_v62 }
 0xd64   :  { %v1273_v12 = vsel %vm224_vm1, %v3489_v3, 0 }
 0xd65   :  { %v1270_v8 = vsel %vm224_vm1, %v3491_v4, 0 }
 0xd66   :  { %2694 = vmatpush3.bf16.xpose.msra.mxu1 %v1261_v5 }
 0xd67   :  { %2695 = vmatprep.subr.bf16.mxu1 %v3020_v1 }
 0xd6e   :  { %2696 = vmatpush3.bf16.xpose.msra.mxu1 %v1264_v6 }
 0xd6f   :  { %2697 = vmatprep.subr.bf16.mxu1 %v3020_v1 }
 0xd76   :  { %2698 = vmatpush3.bf16.xpose.msra.mxu1 %v1267_v7 }
 0xd77   :  { %2699 = vmatprep.subr.bf16.mxu1 %v3020_v1 }
 0xd7e   :  { %2700 = vmatpush3.bf16.xpose.msra.mxu1 %v1270_v8 }
 0xd7f   :  { %2701 = vmatprep.subr.bf16.mxu1 %v3020_v1 }
 0xd86   :  { %2702 = vmatpush3.bf16.xpose.msra.mxu1 %v1273_v12 }
 0xd87   :  { %2753 = vmatprep.subr.bf16.mxu1 %v3020_v1 }
 0xd8d   :  { %2704 = vmatmul.mubr.msk.bf16.vlgmr.msra.gmra.mrb[56].mxu1 %vm224_vm1, %v3512_v14 }
 0xd8e   :  { %2769 = vmatprep.mubr.msk.bf16.mxu1 %vm3021_vm0, %v3020_v1 }
 0xdbf   :  { %v1334_v15 = vpop.permute.xlu0 %1333 }
 0xdc0   :  { %2708 = vmatpush3.bf16.msra.mxu0 %v1334_v15 }
 0xdc1   :  { %2709 = vmatprep.subr.bf16.mxu0 %v3020_v1 }
 0xe60   :  { %v1309_v18 = vpop.f32.mrb[56].mxu1 }
 0xe61   :  { %v1310_v19 = vadd.f32 %v1309_v18, %v3522_v17  ;;  %v2705_v20 = vpop.f32.mrb[57].mxu1 }
 0xe62   :  { %v1312_v21 = vpop.f32.mrb[58].mxu1 }
 0xe63   :  { %1315 = vmax.xlane.f32.xlu1 %v1310_v19  ;;  %v2706_v22 = vpop.f32.mrb[59].mxu1 }
 0xe74   :  { %1335 = vrot.lane.b32.xlu1 %v3466_v34, %s3022_s8 }
 0xe78   :  { %1337 = vrot.lane.b32.xlu1 %v3477_v46, %s3022_s8 }
 0xe7c   :  { %1341 = vrot.lane.b32.xlu1 %v3484_v57, %s3022_s8 }
 0xe80   :  { %1343 = vrot.lane.b32.xlu1 %v3482_v56, %s3022_s8 }
 0xe84   :  { %1345 = vrot.lane.b32.xlu1 %v3491_v4, %s3022_s8 }
 0xe88   :  { %1347 = vrot.lane.b32.xlu1 %v3489_v3, %s3022_s8 }
 0xe8c   :  { %1455 = vrot.lane.b32.xlu1 %v3468_v35, %s3025_s28 }
 0xe90   :  { %1459 = vrot.lane.b32.xlu1 %v3477_v46, %s3025_s28 }
 0xe94   :  { %1463 = vrot.lane.b32.xlu1 %v3484_v57, %s3025_s28 }
 0xe98   :  { %1467 = vrot.lane.b32.xlu1 %v3491_v4, %s3025_s28 }
 0xe9c   :  { %1453 = vrot.lane.b32.xlu1 %v3512_v14, %s3025_s28 }
 0xea0   :  { %1548 = vrot.lane.b32.xlu1 %v3468_v35, %s3024_s4 }
 0xea4   :  { %1552 = vrot.lane.b32.xlu1 %v3477_v46, %s3024_s4 }
 0xea8   :  { %1558 = vrot.lane.b32.xlu1 %v3482_v56, %s3024_s4 }
 0xef0   :  { %v1316_v23 = vpop.xlane.xlu1 %1315 }
 0xef1   :  { %v1317_v24 = vsub.f32 %v1310_v19, %v1316_v23 }
 0xef3   :  { %v1318_v25 = vmul.f32 1.442695, %v1317_v24 }
 0xef4   :  { %v1336_v26 = vpop.permute.xlu1 %1335 }
 0xef5   :  { %2952 = vpow2.f32 %v1318_v25  ;;  %2710 = vmatpush3.bf16.msra.mxu0 %v1336_v26 }
 0xef6   :  { %2711 = vmatprep.subr.bf16.mxu0 %v3020_v1 }
 0xef8   :  { %v1338_v27 = vpop.permute.xlu1 %1337 }
 0xef9   :  { %2712 = vmatpush3.bf16.msra.mxu0 %v1338_v27 }
 0xefa   :  { %2713 = vmatprep.subr.bf16.mxu0 %v3020_v1 }
 0xefc   :  { %v1342_v28 = vpop.permute.xlu1 %1341 }
 0xeff   :  { %v2953_v29 = vpop.eup %2952 }
 0xf00   :  { %1320 = vadd.xlane.f32.xlu0 %v2953_v29  ;;  %v1344_v30 = vpop.permute.xlu1 %1343 }
 0xf04   :  { %v1346_v9 = vpop.permute.xlu1 %1345 }
 0xf08   :  { %v1348_v31 = vpop.permute.xlu1 %1347 }
 0xf0c   :  { %v1456_v32 = vpop.permute.xlu1 %1455 }
 0xf0d   :  { %v1475_v54 = vsel %vm224_vm1, %v1456_v32, 0 }
 0xf10   :  { %v1460_v33 = vpop.permute.xlu1 %1459 }
 0xf11   :  { %v1481_v59 = vsel %vm224_vm1, %v1460_v33, 0 }
 0xf14   :  { %v1464_v36 = vpop.permute.xlu1 %1463 }
 0xf15   :  { %v1487_v62 = vsel %vm224_vm1, %v1464_v36, 0 }
 0xf16   :  { %1339 = vrot.lane.b32.xlu0 %v3475_v45, %s3022_s8 }
 0xf18   :  { %v1468_v37 = vpop.permute.xlu1 %1467 }
 0xf19   :  { %v1493_v0 = vsel %vm224_vm1, %v1468_v37, 0 }
 0xf1a   :  { %1457 = vrot.lane.b32.xlu0 %v3466_v34, %s3025_s28 }
 0xf1c   :  { %v3559_v38 = vpop.permute.xlu1 %1453 }
 0xf1e   :  { %1461 = vrot.lane.b32.xlu0 %v3475_v45, %s3025_s28 }
 0xf20   :  { %v1549_v39 = vpop.permute.xlu1 %1548 }
 0xf21   :  { %2754 = vmatpush3.bf16.msra.mxu1 %v1549_v39 }
 0xf22   :  { %1465 = vrot.lane.b32.xlu0 %v3482_v56, %s3025_s28  ;;  %2755 = vmatprep.subr.bf16.mxu1 %v3020_v1 }
 0xf24   :  { %v1553_v24 = vpop.permute.xlu1 %1552 }
 0xf26   :  { %1469 = vrot.lane.b32.xlu0 %v3489_v3, %s3025_s28 }
 0xf8d   :  { %v1321_v40 = vpop.xlane.xlu0 %1320 }
 0xf8e   :  { %2954 = vrcp.f32 %v1321_v40  ;;  %v2376_v40 = vld [vmem:[%s3870_s14 + $0x4] sm:$0xf] }
 0xf91   :  { %v1340_v41 = vpop.permute.xlu0 %1339 }
 0xf92   :  { %2714 = vmatpush3.bf16.msra.mxu0 %v1340_v41 }
 0xf93   :  { %2715 = vmatprep.subr.bf16.mxu0 %v3020_v1 }
 0xf95   :  { %v1458_v55 = vpop.permute.xlu0 %1457 }
 0xf96   :  { %2716 = vmatpush3.bf16.msra.mxu0 %v1342_v28  ;;  %v1478_v58 = vsel %vm224_vm1, %v1458_v55, 0 }
 0xf97   :  { %2717 = vmatprep.subr.bf16.mxu0 %v3020_v1 }
 0xf98   :  { %v2955_v42 = vpop.eup %2954 }
 0xf99   :  { %v1323_v43 = vmul.f32 %v2955_v42, %v2953_v29  ;;  %v1462_v60 = vpop.permute.xlu0 %1461  ;;  %v1559_v29 = vpop.permute.xlu1 %1558 }
 0xf9a   :  { %2718 = vmatpush3.bf16.msra.mxu0 %v1344_v30  ;;  %v1484_v61 = vsel %vm224_vm1, %v1462_v60, 0 }
 0xf9b   :  { %2719 = vmatprep.subr.bf16.mxu0 %v3020_v1  ;;  %v1324_v47 = vpack.c.bf16 %v1323_v43, %v1323_v43  ;;  %v1619_v43 = vsel %vm288_vm2, %v2376_v40, 0 }
 0xf9d   :  { %v1466_v63 = vpop.permute.xlu0 %1465 }
 0xf9e   :  { %2720 = vmatpush3.bf16.msra.mxu0 %v1346_v9  ;;  %v1490_v16 = vsel %vm224_vm1, %v1466_v63, 0 }
 0xf9f   :  { %2721 = vmatprep.subr.bf16.mxu0 %v3020_v1 }
 0xfa1   :  { %v1470_v2 = vpop.permute.xlu0 %1469 }
 0xfa2   :  { %2722 = vmatpush3.bf16.msra.mxu0 %v1348_v31  ;;  %v1496_v5 = vsel %vm224_vm1, %v1470_v2, 0 }
 0xfa3   :  { %2727 = vmatprep.subr.bf16.mxu0 %v3020_v1 }
 0xfa5   :  { %2724 = vmatmul.mubr.bf16.vlgmr.msra.gmra.mrb[20].mxu0 %v1324_v47 }
 0xfa6   :  { %2728 = vmatpush3.bf16.msra.mxu0 %v1403_v48  ;;  %2729 = vmatprep.mubr.msk.bf16.mxu0 %vm3021_vm0, %v3020_v1 }
 0xfa7   :  { %2733 = vmatprep.subr.bf16.mxu0 %v3020_v1 }
0x1078   :  { %v1391_v49 = vpop.f32.mrb[20].mxu0 }
0x1079   :  { %v1397_v10 = vpack.c.bf16 %v1391_v49, %v1391_v49  ;;  %v2725_v50 = vpop.f32.mrb[21].mxu0 }
0x107a   :  { %v1394_v52 = vpop.f32.mrb[22].mxu0 }
0x107b   :  { %v2726_v53 = vpop.f32.mrb[23].mxu0  ;;  %2730 = vmatmul.mubr.msk.bf16.vlgmr.msra.gmra.mrb[24].mxu0 %vm224_vm1, %v1397_v10 }
0x107c   :  { %2734 = vmatpush3.bf16.xpose.msra.mxu0 %v1475_v54  ;;  %2749 = vmatprep.mubr.msk.bf16.mxu0 %vm3021_vm0, %v3020_v1 }
0x107d   :  { %2735 = vmatprep.subr.bf16.mxu0 %v3020_v1 }
0x1084   :  { %2736 = vmatpush3.bf16.xpose.msra.mxu0 %v1478_v58 }
0x1085   :  { %2737 = vmatprep.subr.bf16.mxu0 %v3020_v1 }
0x108c   :  { %2738 = vmatpush3.bf16.xpose.msra.mxu0 %v1481_v59 }
0x108d   :  { %2739 = vmatprep.subr.bf16.mxu0 %v3020_v1 }
0x1094   :  { %2740 = vmatpush3.bf16.xpose.msra.mxu0 %v1484_v61 }
0x1095   :  { %2741 = vmatprep.subr.bf16.mxu0 %v3020_v1 }
0x109c   :  { %2742 = vmatpush3.bf16.xpose.msra.mxu0 %v1487_v62 }
0x109d   :  { %2743 = vmatprep.subr.bf16.mxu0 %v3020_v1 }
0x10a4   :  { %2744 = vmatpush3.bf16.xpose.msra.mxu0 %v1490_v16 }
0x10a5   :  { %2745 = vmatprep.subr.bf16.mxu0 %v3020_v1 }
0x10ac   :  { %2746 = vmatpush3.bf16.xpose.msra.mxu0 %v1493_v0  ;;  %v2374_v0 = vld [vmem:[%s3871_s15] ss:$0 sm:$0xff]  ;;  %s3910_s15 = smov 104  }
0x10ad   :  { %2747 = vmatprep.subr.bf16.mxu0 %v3020_v1 }
0x10b4   :  { %2748 = vmatpush3.bf16.xpose.msra.mxu0 %v1496_v5 }
0x10b5   :  { %2799 = vmatprep.subr.bf16.mxu0 %v3020_v1 }
0x10bb   :  { %2750 = vmatmul.mubr.msk.bf16.vlgmr.msra.gmra.mrb[28].mxu0 %vm224_vm1, %v3559_v38 }
0x10bc   :  { %2815 = vmatprep.mubr.msk.bf16.mxu0 %vm3021_vm0, %v3020_v1 }
0x114e   :  { %v3603_v6 = vpop.f32.mrb[24].mxu0 }
0x114f   :  { %v2731_v7 = vpop.f32.mrb[25].mxu0  ;;  %v1451_v2 = vadd.f32 %v2374_v0, %v3603_v6 }
0x1150   :  { %v1442_v8 = vpop.f32.mrb[26].mxu0 }
0x1151   :  { %v2732_v11 = vpop.f32.mrb[27].mxu0 }
0x118e   :  { %v1532_v12 = vpop.f32.mrb[28].mxu0 }
0x118f   :  { %v1533_v13 = vadd.f32 %v1532_v12, %v3522_v17  ;;  %v2751_v15 = vpop.f32.mrb[29].mxu0 }
0x1190   :  { %v1535_v18 = vpop.f32.mrb[30].mxu0 }
0x1191   :  { %1538 = vmax.xlane.f32.xlu0 %v1533_v13  ;;  %v2752_v19 = vpop.f32.mrb[31].mxu0 }
0x11a7   :  { %1550 = vrot.lane.b32.xlu0 %v3466_v34, %s3024_s4 }
0x11ab   :  { %1554 = vrot.lane.b32.xlu0 %v3475_v45, %s3024_s4 }
0x11af   :  { %1556 = vrot.lane.b32.xlu0 %v3484_v57, %s3024_s4 }
0x11b3   :  { %1560 = vrot.lane.b32.xlu0 %v3491_v4, %s3024_s4 }
0x11b7   :  { %1664 = vrot.lane.b32.xlu0 %v3468_v35, %s3027_s5 }
0x11bb   :  { %1668 = vrot.lane.b32.xlu0 %v3477_v46, %s3027_s5 }
0x11bf   :  { %1672 = vrot.lane.b32.xlu0 %v3484_v57, %s3027_s5 }
0x11c3   :  { %1676 = vrot.lane.b32.xlu0 %v3491_v4, %s3027_s5 }
0x11c7   :  { %1662 = vrot.lane.b32.xlu0 %v3512_v14, %s3027_s5 }
0x11cb   :  { %1757 = vrot.lane.b32.xlu0 %v3468_v35, %s3026_s9 }
0x11cf   :  { %1761 = vrot.lane.b32.xlu0 %v3477_v46, %s3026_s9 }
0x11d3   :  { %1767 = vrot.lane.b32.xlu0 %v3482_v56, %s3026_s9 }
0x121e   :  { %v1539_v20 = vpop.xlane.xlu0 %1538 }
0x121f   :  { %v1540_v21 = vsub.f32 %v1533_v13, %v1539_v20 }
0x1221   :  { %v1541_v22 = vmul.f32 1.442695, %v1540_v21 }
0x1222   :  { %v1551_v23 = vpop.permute.xlu0 %1550 }
0x1223   :  { %2956 = vpow2.f32 %v1541_v22  ;;  %2756 = vmatpush3.bf16.msra.mxu1 %v1551_v23 }
0x1224   :  { %2757 = vmatprep.subr.bf16.mxu1 %v3020_v1 }
0x1226   :  { %v1555_v25 = vpop.permute.xlu0 %1554 }
0x1227   :  { %2758 = vmatpush3.bf16.msra.mxu1 %v1553_v24 }
0x1228   :  { %2759 = vmatprep.subr.bf16.mxu1 %v3020_v1 }
0x122a   :  { %v1557_v26 = vpop.permute.xlu0 %1556 }
0x122b   :  { %2760 = vmatpush3.bf16.msra.mxu1 %v1555_v25 }
0x122c   :  { %2761 = vmatprep.subr.bf16.mxu1 %v3020_v1 }
0x122d   :  { %v2957_v27 = vpop.eup %2956 }
0x122e   :  { %1543 = vadd.xlane.f32.xlu1 %v2957_v27  ;;  %v1561_v28 = vpop.permute.xlu0 %1560 }
0x122f   :  { %2762 = vmatpush3.bf16.msra.mxu1 %v1557_v26 }
0x1230   :  { %2763 = vmatprep.subr.bf16.mxu1 %v3020_v1 }
0x1232   :  { %v1665_v30 = vpop.permute.xlu0 %1664 }
0x1233   :  { %2764 = vmatpush3.bf16.msra.mxu1 %v1559_v29  ;;  %v1684_v10 = vsel %vm224_vm1, %v1665_v30, 0 }
0x1234   :  { %2765 = vmatprep.subr.bf16.mxu1 %v3020_v1 }
0x1236   :  { %v1669_v9 = vpop.permute.xlu0 %1668 }
0x1237   :  { %2766 = vmatpush3.bf16.msra.mxu1 %v1561_v28  ;;  %v1690_v53 = vsel %vm224_vm1, %v1669_v9, 0 }
0x1238   :  { %2767 = vmatprep.subr.bf16.mxu1 %v3020_v1 }
0x123a   :  { %v1673_v31 = vpop.permute.xlu0 %1672 }
0x123b   :  { %v1696_v59 = vsel %vm224_vm1, %v1673_v31, 0 }
0x123e   :  { %v1677_v32 = vpop.permute.xlu0 %1676 }
0x123f   :  { %1562 = vrot.lane.b32.xlu1 %v3489_v3, %s3024_s4  ;;  %v1702_v62 = vsel %vm224_vm1, %v1677_v32, 0 }
0x1242   :  { %v1663_v33 = vpop.permute.xlu0 %1662 }
0x1243   :  { %1666 = vrot.lane.b32.xlu1 %v3466_v34, %s3027_s5 }
0x1246   :  { %v1758_v36 = vpop.permute.xlu0 %1757 }
0x1247   :  { %1670 = vrot.lane.b32.xlu1 %v3475_v45, %s3027_s5  ;;  %2800 = vmatpush3.bf16.msra.mxu0 %v1758_v36 }
0x1248   :  { %2801 = vmatprep.subr.bf16.mxu0 %v3020_v1 }
0x124a   :  { %v1762_v24 = vpop.permute.xlu0 %1761 }
0x124b   :  { %1674 = vrot.lane.b32.xlu1 %v3482_v56, %s3027_s5 }
0x124e   :  { %v1768_v26 = vpop.permute.xlu0 %1767 }
0x124f   :  { %1678 = vrot.lane.b32.xlu1 %v3489_v3, %s3027_s5 }
0x12bb   :  { %v1544_v37 = vpop.xlane.xlu1 %1543 }
0x12bc   :  { %2958 = vrcp.f32 %v1544_v37  ;;  %v2379_v37 = vld [vmem:[%s3870_s14 + $0x8] sm:$0xf] }
0x12bd   :  { %v1828_v40 = vsel %vm288_vm2, %v2379_v37, 0 }
0x12bf   :  { %v1563_v38 = vpop.permute.xlu1 %1562 }
0x12c0   :  { %2768 = vmatpush3.bf16.msra.mxu1 %v1563_v38 }
0x12c1   :  { %2773 = vmatprep.subr.bf16.mxu1 %v3020_v1 }
0x12c3   :  { %v1667_v52 = vpop.permute.xlu1 %1666 }
0x12c4   :  { %v1687_v54 = vsel %vm224_vm1, %v1667_v52, 0 }
0x12c6   :  { %v2959_v39 = vpop.eup %2958 }
0x12c7   :  { %v1546_v41 = vmul.f32 %v2959_v39, %v2957_v27  ;;  %v1671_v55 = vpop.permute.xlu1 %1670 }
0x12c8   :  { %v1693_v58 = vsel %vm224_vm1, %v1671_v55, 0 }
0x12c9   :  { %v1547_v42 = vpack.c.bf16 %v1546_v41, %v1546_v41 }
0x12cb   :  { %2770 = vmatmul.mubr.bf16.vlgmr.msra.gmra.mrb[60].mxu1 %v1547_v42  ;;  %v1675_v60 = vpop.permute.xlu1 %1674 }
0x12cc   :  { %2774 = vmatpush3.bf16.msra.mxu1 %v1619_v43  ;;  %2775 = vmatprep.mubr.msk.bf16.mxu1 %vm3021_vm0, %v3020_v1  ;;  %v1699_v61 = vsel %vm224_vm1, %v1675_v60, 0 }
0x12cd   :  { %2779 = vmatprep.subr.bf16.mxu1 %v3020_v1 }
0x12cf   :  { %v1679_v63 = vpop.permute.xlu1 %1678 }
0x12d0   :  { %v1705_v16 = vsel %vm224_vm1, %v1679_v63, 0 }
0x139e   :  { %v1606_v44 = vpop.f32.mrb[60].mxu1 }
0x139f   :  { %v1612_v47 = vpack.c.bf16 %v1606_v44, %v1606_v44  ;;  %v2771_v48 = vpop.f32.mrb[61].mxu1 }
0x13a0   :  { %v1609_v49 = vpop.f32.mrb[62].mxu1 }
0x13a1   :  { %v2772_v50 = vpop.f32.mrb[63].mxu1  ;;  %2776 = vmatmul.mubr.msk.bf16.vlgmr.msra.gmra.mrb[64].mxu1 %vm224_vm1, %v1612_v47 }
0x13a2   :  { %2780 = vmatpush3.bf16.xpose.msra.mxu1 %v1684_v10  ;;  %2795 = vmatprep.mubr.msk.bf16.mxu1 %vm3021_vm0, %v3020_v1 }
0x13a3   :  { %2781 = vmatprep.subr.bf16.mxu1 %v3020_v1 }
0x13aa   :  { %2782 = vmatpush3.bf16.xpose.msra.mxu1 %v1687_v54 }
0x13ab   :  { %2783 = vmatprep.subr.bf16.mxu1 %v3020_v1 }
0x13b2   :  { %2784 = vmatpush3.bf16.xpose.msra.mxu1 %v1690_v53 }
0x13b3   :  { %2785 = vmatprep.subr.bf16.mxu1 %v3020_v1 }
0x13ba   :  { %2786 = vmatpush3.bf16.xpose.msra.mxu1 %v1693_v58 }
0x13bb   :  { %2787 = vmatprep.subr.bf16.mxu1 %v3020_v1 }
0x13c2   :  { %2788 = vmatpush3.bf16.xpose.msra.mxu1 %v1696_v59 }
0x13c3   :  { %2789 = vmatprep.subr.bf16.mxu1 %v3020_v1 }
0x13ca   :  { %2790 = vmatpush3.bf16.xpose.msra.mxu1 %v1699_v61 }
0x13cb   :  { %2791 = vmatprep.subr.bf16.mxu1 %v3020_v1 }
0x13d2   :  { %2792 = vmatpush3.bf16.xpose.msra.mxu1 %v1702_v62 }
0x13d3   :  { %2793 = vmatprep.subr.bf16.mxu1 %v3020_v1 }
0x13da   :  { %2794 = vmatpush3.bf16.xpose.msra.mxu1 %v1705_v16 }
0x13db   :  { %2845 = vmatprep.subr.bf16.mxu1 %v3020_v1 }
0x13e1   :  { %2796 = vmatmul.mubr.msk.bf16.vlgmr.msra.gmra.mrb[68].mxu1 %vm224_vm1, %v1663_v33 }
0x13e2   :  { %2861 = vmatprep.mubr.msk.bf16.mxu1 %vm3021_vm0, %v3020_v1 }
0x1474   :  { %v1655_v5 = vpop.f32.mrb[64].mxu1 }
0x1475   :  { %v3681_v7 = vadd.f32 %v1655_v5, %v1451_v2  ;;  %v2777_v8 = vpop.f32.mrb[65].mxu1 }
0x1476   :  { %v1658_v11 = vpop.f32.mrb[66].mxu1 }
0x1477   :  { %v2778_v12 = vpop.f32.mrb[67].mxu1 }
0x14b4   :  { %v1741_v13 = vpop.f32.mrb[68].mxu1 }
0x14b5   :  { %v1742_v15 = vadd.f32 %v1741_v13, %v3522_v17  ;;  %v2797_v18 = vpop.f32.mrb[69].mxu1 }
0x14b6   :  { %v1744_v19 = vpop.f32.mrb[70].mxu1 }
0x14b7   :  { %1747 = vmax.xlane.f32.xlu1 %v1742_v15  ;;  %v2798_v20 = vpop.f32.mrb[71].mxu1 }
0x14c8   :  { %1759 = vrot.lane.b32.xlu1 %v3466_v34, %s3026_s9 }
0x14cc   :  { %1763 = vrot.lane.b32.xlu1 %v3475_v45, %s3026_s9 }
0x14d0   :  { %1765 = vrot.lane.b32.xlu1 %v3484_v57, %s3026_s9 }
0x14d4   :  { %1769 = vrot.lane.b32.xlu1 %v3491_v4, %s3026_s9 }
0x14d8   :  { %1873 = vrot.lane.b32.xlu1 %v3468_v35, %s3910_s15 }
0x14dc   :  { %1877 = vrot.lane.b32.xlu1 %v3477_v46, %s3910_s15 }
0x14e0   :  { %1881 = vrot.lane.b32.xlu1 %v3484_v57, %s3910_s15 }
0x14e4   :  { %1885 = vrot.lane.b32.xlu1 %v3491_v4, %s3910_s15 }
0x14e8   :  { %1871 = vrot.lane.b32.xlu1 %v3512_v14, %s3910_s15 }
0x14ec   :  { %1966 = vrot.lane.b32.xlu1 %v3468_v35, %s3911_s29 }
0x14f0   :  { %1970 = vrot.lane.b32.xlu1 %v3477_v46, %s3911_s29 }
0x14f4   :  { %1976 = vrot.lane.b32.xlu1 %v3482_v56, %s3911_s29 }
0x1544   :  { %v1748_v6 = vpop.xlane.xlu1 %1747 }
0x1545   :  { %v1749_v21 = vsub.f32 %v1742_v15, %v1748_v6 }
0x1547   :  { %v1750_v22 = vmul.f32 1.442695, %v1749_v21 }
0x1548   :  { %v1760_v23 = vpop.permute.xlu1 %1759 }
0x1549   :  { %2960 = vpow2.f32 %v1750_v22  ;;  %2802 = vmatpush3.bf16.msra.mxu0 %v1760_v23  ;;  %v2382_v22 = vld [vmem:[%s3870_s14 + $0xc] sm:$0xf] }
0x154a   :  { %2803 = vmatprep.subr.bf16.mxu0 %v3020_v1 }
0x154c   :  { %v1764_v25 = vpop.permute.xlu1 %1763 }
0x154d   :  { %2804 = vmatpush3.bf16.msra.mxu0 %v1762_v24 }
0x154e   :  { %2805 = vmatprep.subr.bf16.mxu0 %v3020_v1 }
0x1550   :  { %v1766_v35 = vpop.permute.xlu1 %1765 }
0x1551   :  { %2806 = vmatpush3.bf16.msra.mxu0 %v1764_v25  ;;  %v2037_v25 = vsel %vm288_vm2, %v2382_v22, 0 }
0x1552   :  { %2807 = vmatprep.subr.bf16.mxu0 %v3020_v1 }
0x1553   :  { %v2961_v46 = vpop.eup %2960 }
0x1554   :  { %1752 = vadd.xlane.f32.xlu0 %v2961_v46  ;;  %v1770_v14 = vpop.permute.xlu1 %1769 }
0x1555   :  { %2808 = vmatpush3.bf16.msra.mxu0 %v1766_v35 }
0x1556   :  { %2809 = vmatprep.subr.bf16.mxu0 %v3020_v1 }
0x1558   :  { %v1874_v27 = vpop.permute.xlu1 %1873 }
0x1559   :  { %2810 = vmatpush3.bf16.msra.mxu0 %v1768_v26  ;;  %v1893_v44 = vsel %vm224_vm1, %v1874_v27, 0 }
0x155a   :  { %2811 = vmatprep.subr.bf16.mxu0 %v3020_v1 }
0x155c   :  { %v1878_v28 = vpop.permute.xlu1 %1877 }
0x155d   :  { %2812 = vmatpush3.bf16.msra.mxu0 %v1770_v14  ;;  %v1899_v10 = vsel %vm224_vm1, %v1878_v28, 0 }
0x155e   :  { %2813 = vmatprep.subr.bf16.mxu0 %v3020_v1 }
0x1560   :  { %v1882_v29 = vpop.permute.xlu1 %1881 }
0x1561   :  { %v1905_v54 = vsel %vm224_vm1, %v1882_v29, 0 }
0x1564   :  { %v1886_v30 = vpop.permute.xlu1 %1885 }
0x1565   :  { %v1911_v58 = vsel %vm224_vm1, %v1886_v30, 0 }
0x1568   :  { %v1872_v9 = vpop.permute.xlu1 %1871 }
0x156a   :  { %1771 = vrot.lane.b32.xlu0 %v3489_v3, %s3026_s9 }
0x156c   :  { %v1967_v31 = vpop.permute.xlu1 %1966 }
0x156d   :  { %2846 = vmatpush3.bf16.msra.mxu1 %v1967_v31 }
0x156e   :  { %1875 = vrot.lane.b32.xlu0 %v3466_v34, %s3910_s15  ;;  %2847 = vmatprep.subr.bf16.mxu1 %v3020_v1 }
0x1570   :  { %v1971_v18 = vpop.permute.xlu1 %1970 }
0x1572   :  { %1879 = vrot.lane.b32.xlu0 %v3475_v45, %s3910_s15 }
0x1576   :  { %1883 = vrot.lane.b32.xlu0 %v3482_v56, %s3910_s15 }
0x157a   :  { %1887 = vrot.lane.b32.xlu0 %v3489_v3, %s3910_s15 }
0x15e1   :  { %v1753_v32 = vpop.xlane.xlu0 %1752 }
0x15e2   :  { %2962 = vrcp.f32 %v1753_v32 }
0x15e5   :  { %v1772_v33 = vpop.permute.xlu0 %1771 }
0x15e6   :  { %2814 = vmatpush3.bf16.msra.mxu0 %v1772_v33 }
0x15e7   :  { %2819 = vmatprep.subr.bf16.mxu0 %v3020_v1 }
0x15e9   :  { %v1876_v48 = vpop.permute.xlu0 %1875 }
0x15ea   :  { %v1896_v49 = vsel %vm224_vm1, %v1876_v48, 0  ;;  %v2384_v48 = vld [vmem:[%s3872_s16] ss:$0 sm:$0xff] }
0x15ec   :  { %v2963_v36 = vpop.eup %2962 }
0x15ed   :  { %v1755_v38 = vmul.f32 %v2963_v36, %v2961_v46  ;;  %v1880_v50 = vpop.permute.xlu0 %1879 }
0x15ee   :  { %v1902_v52 = vsel %vm224_vm1, %v1880_v50, 0 }
0x15ef   :  { %v1756_v39 = vpack.c.bf16 %v1755_v38, %v1755_v38 }
0x15f1   :  { %2816 = vmatmul.mubr.bf16.vlgmr.msra.gmra.mrb[32].mxu0 %v1756_v39  ;;  %v1884_v53 = vpop.permute.xlu0 %1883 }
0x15f2   :  { %2820 = vmatpush3.bf16.msra.mxu0 %v1828_v40  ;;  %2821 = vmatprep.mubr.msk.bf16.mxu0 %vm3021_vm0, %v3020_v1  ;;  %v1908_v55 = vsel %vm224_vm1, %v1884_v53, 0  ;;  %v2928_v40 = vld [vmem:[%s3874_s18] sm:$0xff]   ;;  %v2932_v53 = vld [vmem:[%s3876_s20 + $0x10] sm:$0xff]  }
0x15f3   :  { %2825 = vmatprep.subr.bf16.mxu0 %v3020_v1 }
0x15f5   :  { %v1888_v59 = vpop.permute.xlu0 %1887 }
0x15f6   :  { %v1914_v60 = vsel %vm224_vm1, %v1888_v59, 0 }
0x16c4   :  { %v1815_v56 = vpop.f32.mrb[32].mxu0 }
0x16c5   :  { %v1821_v41 = vpack.c.bf16 %v1815_v56, %v1815_v56  ;;  %v2817_v42 = vpop.f32.mrb[33].mxu0  ;;  %v2930_v56 = vld [vmem:[%s3876_s20] sm:$0xff]  }
0x16c6   :  { %v1818_v43 = vpop.f32.mrb[34].mxu0 }
0x16c7   :  { %v2818_v47 = vpop.f32.mrb[35].mxu0  ;;  %2822 = vmatmul.mubr.msk.bf16.vlgmr.msra.gmra.mrb[36].mxu0 %vm224_vm1, %v1821_v41  ;;  %v2931_v41 = vld [vmem:[%s3876_s20 + $0x8] sm:$0xff]  }
0x16c8   :  { %2826 = vmatpush3.bf16.xpose.msra.mxu0 %v1893_v44  ;;  %2841 = vmatprep.mubr.msk.bf16.mxu0 %vm3021_vm0, %v3020_v1 }
0x16c9   :  { %2827 = vmatprep.subr.bf16.mxu0 %v3020_v1 }
0x16d0   :  { %2828 = vmatpush3.bf16.xpose.msra.mxu0 %v1896_v49 }
0x16d1   :  { %2829 = vmatprep.subr.bf16.mxu0 %v3020_v1 }
0x16d8   :  { %2830 = vmatpush3.bf16.xpose.msra.mxu0 %v1899_v10  ;;  %v2385_v10 = vld [vmem:[%s3873_s17] ss:$0 sm:$0xff] }
0x16d9   :  { %2831 = vmatprep.subr.bf16.mxu0 %v3020_v1 }
0x16e0   :  { %2832 = vmatpush3.bf16.xpose.msra.mxu0 %v1902_v52 }
0x16e1   :  { %2833 = vmatprep.subr.bf16.mxu0 %v3020_v1 }
0x16e8   :  { %2834 = vmatpush3.bf16.xpose.msra.mxu0 %v1905_v54 }
0x16e9   :  { %2835 = vmatprep.subr.bf16.mxu0 %v3020_v1 }
0x16f0   :  { %2836 = vmatpush3.bf16.xpose.msra.mxu0 %v1908_v55  ;;  %v2933_v55 = vld [vmem:[%s3876_s20 + $0x18] sm:$0xff]  }
0x16f1   :  { %2837 = vmatprep.subr.bf16.mxu0 %v3020_v1 }
0x16f8   :  { %2838 = vmatpush3.bf16.xpose.msra.mxu0 %v1911_v58  ;;  %v2386_v58 = vld [vmem:[%s3875_s19] ss:$0 sm:$0xff]  ;;  %s3033_s19 = smov [#allocation4]  }
0x16f9   :  { %2839 = vmatprep.subr.bf16.mxu0 %v3020_v1  ;;  %s2308_s20 = sshll.u32 %s3033_s19, 4  ;;  %s2309_s20 = int_to_ptr.vmem [resolvable:$true] %s2308_s20 }
0x16fa   :  { %p2977_p1 = scmp.lt.s32.totalorder %s2309_s20, %s2309_s20 }
0x1700   :  { %2840 = vmatpush3.bf16.xpose.msra.mxu0 %v1914_v60 }
0x1701   :  { %2879 = vmatprep.subr.bf16.mxu0 %v3020_v1 }
0x1707   :  { %2842 = vmatmul.mubr.msk.bf16.vlgmr.msra.gmra.mrb[40].mxu0 %vm224_vm1, %v1872_v9 }
0x1708   :  { %2887 = vmatprep.mubr.msk.bf16.mxu0 %vm3021_vm0, %v3020_v1  ;;  %2880 = vmatpush3.bf16.msra.mxu0 %v2930_v56 }
0x1709   :  { %2881 = vmatprep.subr.bf16.mxu0 %v3020_v1 }
0x170c   :  { %2882 = vmatpush3.bf16.msra.mxu0 %v2931_v41 }
0x170d   :  { %2883 = vmatprep.subr.bf16.mxu0 %v3020_v1 }
0x1710   :  { %2884 = vmatpush3.bf16.msra.mxu0 %v2932_v53 }
0x1711   :  { %2885 = vmatprep.subr.bf16.mxu0 %v3020_v1 }
0x1714   :  { %2886 = vmatpush3.bf16.msra.mxu0 %v2933_v55 }
0x179a   :  { %v1864_v61 = vpop.f32.mrb[36].mxu0 }
0x179b   :  { %v1870_v62 = vadd.f32 %v1864_v61, %v3681_v7  ;;  %v2823_v63 = vpop.f32.mrb[37].mxu0 }
0x179c   :  { %v1867_v16 = vpop.f32.mrb[38].mxu0 }
0x179d   :  { %v2824_v0 = vpop.f32.mrb[39].mxu0 }
0x17da   :  { %v1950_v2 = vpop.f32.mrb[40].mxu0 }
0x17db   :  { %v1951_v5 = vadd.f32 %v1950_v2, %v3522_v17  ;;  %v2843_v8 = vpop.f32.mrb[41].mxu0 }
0x17dc   :  { %v1953_v11 = vpop.f32.mrb[42].mxu0 }
0x17dd   :  { %1956 = vmax.xlane.f32.xlu0 %v1951_v5  ;;  %v2844_v12 = vpop.f32.mrb[43].mxu0 }
0x17f3   :  { %1968 = vrot.lane.b32.xlu0 %v3466_v34, %s3911_s29 }
0x17f7   :  { %1972 = vrot.lane.b32.xlu0 %v3475_v45, %s3911_s29 }
0x17fb   :  { %1974 = vrot.lane.b32.xlu0 %v3484_v57, %s3911_s29 }
0x17ff   :  { %1978 = vrot.lane.b32.xlu0 %v3491_v4, %s3911_s29  ;;  %v1977_v4 = vpop.permute.xlu1 %1976 }
0x186a   :  { %v1957_v7 = vpop.xlane.xlu0 %1956 }
0x186b   :  { %v1958_v13 = vsub.f32 %v1951_v5, %v1957_v7 }
0x186d   :  { %v1959_v15 = vmul.f32 1.442695, %v1958_v13 }
0x186e   :  { %v1969_v17 = vpop.permute.xlu0 %1968 }
0x186f   :  { %2964 = vpow2.f32 %v1959_v15  ;;  %2848 = vmatpush3.bf16.msra.mxu1 %v1969_v17 }
0x1870   :  { %2849 = vmatprep.subr.bf16.mxu1 %v3020_v1 }
0x1872   :  { %v1973_v34 = vpop.permute.xlu0 %1972 }
0x1873   :  { %2850 = vmatpush3.bf16.msra.mxu1 %v1971_v18 }
0x1874   :  { %2851 = vmatprep.subr.bf16.mxu1 %v3020_v1 }
0x1876   :  { %v1975_v57 = vpop.permute.xlu0 %1974 }
0x1877   :  { %2852 = vmatpush3.bf16.msra.mxu1 %v1973_v34 }
0x1878   :  { %2853 = vmatprep.subr.bf16.mxu1 %v3020_v1 }
0x1879   :  { %v2965_v45 = vpop.eup %2964 }
0x187a   :  { %1961 = vadd.xlane.f32.xlu1 %v2965_v45  ;;  %v1979_v19 = vpop.permute.xlu0 %1978 }
0x187b   :  { %2854 = vmatpush3.bf16.msra.mxu1 %v1975_v57 }
0x187c   :  { %2855 = vmatprep.subr.bf16.mxu1 %v3020_v1 }
0x187f   :  { %2856 = vmatpush3.bf16.msra.mxu1 %v1977_v4 }
0x1880   :  { %2857 = vmatprep.subr.bf16.mxu1 %v3020_v1 }
0x1883   :  { %2858 = vmatpush3.bf16.msra.mxu1 %v1979_v19 }
0x1884   :  { %2859 = vmatprep.subr.bf16.mxu1 %v3020_v1 }
0x188b   :  { %1980 = vrot.lane.b32.xlu1 %v3489_v3, %s3911_s29 }
0x1907   :  { %v1962_v20 = vpop.xlane.xlu1 %1961 }
0x1908   :  { %2966 = vrcp.f32 %v1962_v20 }
0x190b   :  { %v1981_v6 = vpop.permute.xlu1 %1980 }
0x190c   :  { %2860 = vmatpush3.bf16.msra.mxu1 %v1981_v6 }
0x190d   :  { %2865 = vmatprep.subr.bf16.mxu1 %v3020_v1 }
0x1912   :  { %v2967_v21 = vpop.eup %2966 }
0x1913   :  { %v1964_v23 = vmul.f32 %v2967_v21, %v2965_v45 }
0x1915   :  { %v1965_v24 = vpack.c.bf16 %v1964_v23, %v1964_v23 }
0x1917   :  { %2862 = vmatmul.mubr.bf16.vlgmr.msra.gmra.mrb[72].mxu1 %v1965_v24 }
0x1918   :  { %2866 = vmatpush3.bf16.msra.mxu1 %v2037_v25  ;;  %2867 = vmatprep.mubr.msk.bf16.mxu1 %vm3021_vm0, %v3020_v1 }
0x1919   :  { %2871 = vmatprep.subr.bf16.mxu1 %v3020_v1 }
0x19ea   :  { %v2024_v3 = vpop.f32.mrb[72].mxu1 }
0x19eb   :  { %v2030_v35 = vpack.c.bf16 %v2024_v3, %v2024_v3  ;;  %v2863_v46 = vpop.f32.mrb[73].mxu1 }
0x19ec   :  { %v2027_v14 = vpop.f32.mrb[74].mxu1 }
0x19ed   :  { %v2864_v26 = vpop.f32.mrb[75].mxu1  ;;  %2868 = vmatmul.mubr.msk.bf16.vlgmr.msra.gmra.mrb[76].mxu1 %vm224_vm1, %v2030_v35 }
0x19ee   :  { %2875 = vmatprep.mubr.msk.bf16.mxu1 %vm3021_vm0, %v3020_v1  ;;  %2872 = vmatpush3.bf16.msra.mxu1 %v2928_v40 }
0x19ef   :  { %2873 = vmatprep.subr.bf16.mxu1 %v3020_v1  ;;  %v2390_v1 = vld [vmem:[%s3877_s21] ss:$0 sm:$0xff]  ;;  %s2972_s21 = scalar_lea.vmem %s2309_s20, 128 }
0x19f0   :  { %p2973_p0 = scmp.ne.s32.totalorder %s2309_s20, %s2972_s21  ;;  %p2978_p2 = scmp.lt.s32.totalorder %s2972_s21, %s2972_s21 }
0x19f2   :  { %p2979_p3 = por %p2978_p2, %p2977_p1 }
0x19f4   :  { %p2980_p4 = pnand %p2979_p3, %p2973_p0 }
0x1ac0   :  { %v2073_v27 = vpop.f32.mrb[76].mxu1 }
0x1ac1   :  { %v2079_v28 = vadd.f32 %v2073_v27, %v1870_v62  ;;  %v2869_v29 = vpop.f32.mrb[77].mxu1 }
0x1ac2   :  { %v2076_v30 = vpop.f32.mrb[78].mxu1 }
0x1ac3   :  { %v2870_v9 = vpop.f32.mrb[79].mxu1  ;;  %v2080_v31 = vadd.f32 %v2079_v28, %v3394_v51  ;;  %v2929_v51 = vld [vmem:[%s3874_s18 + $0x8] sm:$0xff]  }
0x1ac4   :  { %2874 = vmatpush3.bf16.msra.mxu1 %v2929_v51 }
0x1ac5   :  { %v2081_v32 = vsel %vm873_vm3, %v2080_v31, 0.0 }
0x1ac6   :  { %2082 = vadd.xlane.f32.xlu0 %v2081_v32 }
0x1b53   :  { %v2083_v33 = vpop.xlane.xlu0 %2082 }
0x1b54   :  { %v2084_v36 = vmul.f32 0.03125, %v2083_v33 }
0x1b56   :  { %v2085_v37 = vsub.f32 %v2080_v31, %v2084_v36 }
0x1b58   :  { %v2086_v38 = vmul.f32 %v2085_v37, %v2085_v37 }
0x1b5a   :  { %v2087_v39 = vsel %vm873_vm3, %v2086_v38, 0.0 }
0x1b5b   :  { %2088 = vadd.xlane.f32.xlu1 %v2087_v39 }
0x1be8   :  { %v2089_v42 = vpop.xlane.xlu1 %2088 }
0x1be9   :  { %v2090_v43 = vmul.f32 0.03125, %v2089_v42 }
0x1beb   :  { %v2091_v44 = vadd.f32 1e-05, %v2090_v43 }
0x1bed   :  { %2968 = vrsqrt.f32 %v2091_v44 }
0x1bf7   :  { %v2969_v47 = vpop.eup %2968 }
0x1bf8   :  { %v2093_v49 = vmul.f32 %v2969_v47, %v2085_v37 }
0x1bfa   :  { %v2101_v50 = vmul.f32 %v2384_v48, %v2093_v49 }
0x1bfc   :  { %v2109_v52 = vadd.f32 %v2385_v10, %v2101_v50 }
0x1bfe   :  { %v2110_v54 = vpack.c.bf16 %v2109_v52, %v2109_v52 }
0x1c00   :  { %2876 = vmatmul.mubr.msk.bf16.vlgmr.msra.gmra.mrb[80].mxu1 %vm873_vm3, %v2110_v54 }
0x1cd3   :  { %v2171_v59 = vpop.f32.mrb[80].mxu1 }
0x1cd4   :  { %v2172_v60 = vadd.f32 %v2386_v58, %v2171_v59  ;;  %v2877_v61 = vpop.f32.mrb[81].mxu1 }
0x1cd5   :  { %v2174_v62 = vpop.f32.mrb[82].mxu1 }
0x1cd6   :  { %v2177_v63 = vmax.f32 %v2172_v60, 0.0  ;;  %v2878_v16 = vpop.f32.mrb[83].mxu1 }
0x1cd8   :  { %v2178_v0 = vpack.c.bf16 %v2177_v63, %v2177_v63 }
0x1cda   :  { %2888 = vmatmul.mubr.msk.bf16.vlgmr.msra.gmra.mrb[44].mxu0 %vm1115_vm4, %v2178_v0 }
0x1dad   :  { %v2255_v2 = vpop.f32.mrb[44].mxu0 }
0x1dae   :  { %v2256_v5 = vadd.f32 %v2390_v1, %v2255_v2  ;;  %v2889_v8 = vpop.f32.mrb[45].mxu0 }
0x1daf   :  { %v2258_v11 = vpop.f32.mrb[46].mxu0 }
0x1db0   :  { %v2890_v12 = vpop.f32.mrb[47].mxu0  ;;  %v2261_v7 = vadd.f32 %v2256_v5, %v2109_v52 }
0x1db2   :  { %v2262_v13 = vsel %vm873_vm3, %v2261_v7, 0.0 }
0x1db3   :  { %2263 = vadd.xlane.f32.xlu0 %v2262_v13 }
0x1e40   :  { %v2264_v15 = vpop.xlane.xlu0 %2263 }
0x1e41   :  { %v2265_v17 = vmul.f32 0.03125, %v2264_v15 }
0x1e43   :  { %v2266_v18 = vsub.f32 %v2261_v7, %v2265_v17 }
0x1e45   :  { %v2267_v34 = vmul.f32 %v2266_v18, %v2266_v18 }
0x1e47   :  { %v2268_v45 = vsel %vm873_vm3, %v2267_v34, 0.0 }
0x1e48   :  { %2269 = vadd.xlane.f32.xlu0 %v2268_v45 }
0x1e49   :  { %2983 = shalt.err (!%p2980_p4)
}
0x1e4a   :  { %s2984_s26 = scalar_lea.hbm %s3881_s25, 128 }
0x1e4b   :  { %p2985_p5 = scmp.ne.s32.totalorder %s3881_s25, %s2984_s26  ;;  %p2988_p6 = scmp.lt.u32.totalorder %s2984_s26, %s3881_s25 }
0x1e4d   :  { %p2990_p7 = pnand %p2988_p6, %p2985_p5 }
0x1e4f   :  { %2993 = shalt.err (!%p2990_p7)
}
0x1e50   :  { %2311 = dma.vmem_to_hbm [thread:$0]  %s2309_s20, 128, %s3881_s25, [#allocation5]   ;;  %v2396_v6 = vld [vmem:[%s3878_s22] ss:$0 sm:$0xff] }
0x1e51   :  { %v2397_v22 = vld [vmem:[%s3879_s23] ss:$0 sm:$0xff]  ;;  %s3034_s27 = smov [#allocation2]  }
0x1e52   :  { %s2298_s8 = sshll.u32 %s3034_s27, 4  ;;  %s2299_s8 = int_to_ptr.vmem [resolvable:$true] %s2298_s8 }
0x1e53   :  { %s2994_s25 = scalar_lea.vmem %s2299_s8, 128  ;;  %p2999_p9 = scmp.lt.s32.totalorder %s2299_s8, %s2299_s8 }
0x1e54   :  { %p2995_p8 = scmp.ne.s32.totalorder %s2299_s8, %s2994_s25  ;;  %p3000_p10 = scmp.lt.s32.totalorder %s2994_s25, %s2994_s25 }
0x1e56   :  { %p3001_p11 = por %p3000_p10, %p2999_p9 }
0x1e58   :  { %p3002_p12 = pnand %p3001_p11, %p2995_p8 }
0x1ed5   :  { %v2270_v57 = vpop.xlane.xlu0 %2269 }
0x1ed6   :  { %v2271_v4 = vmul.f32 0.03125, %v2270_v57 }
0x1ed8   :  { %v2272_v19 = vadd.f32 1e-05, %v2271_v4 }
0x1eda   :  { %2970 = vrsqrt.f32 %v2272_v19 }
0x1ee4   :  { %v2971_v20 = vpop.eup %2970 }
0x1ee5   :  { %v2274_v21 = vmul.f32 %v2971_v20, %v2266_v18 }
0x1ee7   :  { %v2282_v23 = vmul.f32 %v2396_v6, %v2274_v21 }
0x1ee9   :  { %v2290_v24 = vadd.f32 %v2397_v22, %v2282_v23 }
0x1eeb   :  { %2291 = vst.msk [vmem:[#allocation2] sm:$0xff] %vm873_vm3, %v2290_v24 }
0x1eec   :  { %3005 = shalt.err (!%p3002_p12)
}
0x1eed   :  { %s3006_s4 = scalar_lea.hbm %s3880_s24, 128 }
0x1eee   :  { %p3007_p13 = scmp.ne.s32.totalorder %s3880_s24, %s3006_s4  ;;  %p3010_p0 = scmp.lt.u32.totalorder %s3006_s4, %s3880_s24 }
0x1ef0   :  { %p3012_p1 = pnand %p3010_p0, %p3007_p13 }
0x1ef2   :  { %3015 = shalt.err (!%p3012_p1)
}
0x1ef3   :  { %2301 = dma.vmem_to_hbm [thread:$0]  %s2299_s8, 128, %s3880_s24, [#allocation3]  }
0x1ef4   :  { %3016 = dma.done.wait [#allocation3], 128  }
0x1ef5   :  { %3017 = vsyncadd [#allocation3], 4294967168 }
0x1ef6   :  { %3018 = dma.done.wait [#allocation5], 128  }
0x1ef7   :  { %3019 = vsyncadd [#allocation5], 4294967168 }
0x1ef8   :  { %2318 = vsyncpa [#allocation3], 1 }
0x1ef9   :  { %2319 = vsyncpa [#allocation5], 1 }

</bundles_post_ra>
